<compile_context>
chip_gen: v6e
topology: v6e:2x2x1
jax: 0.10.0
libtpu: 0.0.40
codegen_flags: <defaults>
</compile_context>

<pallas_src>
import math

import jax
import jax.numpy as jnp
from jax import lax
from jax.experimental import pallas as pl
from jax.experimental.pallas import tpu as pltpu

INPUT_SIZE = 12
HIDDEN_SIZE = 64
OUTPUT_SIZE = 1
LN_EPS = 1e-5


def lstm_model_kernel(x_ref, wf_ref, b_ref, whh_ref, fcw_ref, fcb_ref, out_ref):
    # x_ref:   (T+2, bt, C)   time-major input, zero-padded one step on each end (conv pad=1)
    # wf_ref:  (3, C, 4H)     fused conv->gate weights per tap (g-gate pre-scaled by 2)
    # b_ref:   (1, 4H)        fused bias (conv bias folded through W_ih, + b_ih + b_hh)
    # whh_ref: (H, 4H)        recurrent weights (g-gate columns pre-scaled by 2)
    # fcw_ref: (1, H)         LayerNorm affine folded into the final Linear
    # fcb_ref: (1, 1)
    # out_ref: (1, 1, bt)     lane-dense output row
    t_pad, bt, c_in = x_ref.shape
    T = t_pad - 2
    H = whh_ref.shape[0]

    # ---- hoisted input projection (h-independent, off the serial critical path) ----
    # Leading-dim fold (bt % 8 == 0, last dim unchanged): free relayout.
    x_all = x_ref[...].reshape(t_pad * bt, c_in)
    p0 = jnp.dot(x_all, wf_ref[0], preferred_element_type=jnp.float32)   # (t_pad*bt, 4H)
    p1 = jnp.dot(x_all, wf_ref[1], preferred_element_type=jnp.float32)
    p2 = jnp.dot(x_all, wf_ref[2], preferred_element_type=jnp.float32)
    # U rows [t*bt:(t+1)*bt] = x_pad[t]@Wf0 + x_pad[t+1]@Wf1 + x_pad[t+2]@Wf2 + bias
    u = p0[:T * bt] + p1[bt:(T + 1) * bt] + p2[2 * bt:] + b_ref[...]     # (T*bt, 4H)

    # ---- serial recurrence: one recurrent matmul + activations per time step ----
    h = jnp.zeros((bt, H), jnp.float32)
    c = jnp.zeros((bt, H), jnp.float32)
    for t in range(T):                                   # T small & static: fully unrolled
        gates = u[t * bt:(t + 1) * bt]
        if t > 0:                                        # h == 0 at t == 0: skip the matmul
            gates = gates + jnp.dot(h, whh_ref[...], preferred_element_type=jnp.float32)
        s = jax.nn.sigmoid(gates)                        # one wide sigmoid over (bt, 4H)
        i_g = s[:, 0 * H:1 * H]
        f_g = s[:, 1 * H:2 * H]
        g_g = s[:, 2 * H:3 * H] * 2.0 - 1.0              # tanh(x) = 2*sigmoid(2x) - 1
        o_g = s[:, 3 * H:4 * H]
        c = f_g * c + i_g * g_g
        h = o_g * jnp.tanh(c)

    # ---- LayerNorm statistics over exactly the H valid lanes (no padding involved) ----
    inv_h = 1.0 / H
    mean = jnp.sum(h, axis=-1, keepdims=True) * inv_h
    hc = h - mean
    var = jnp.sum(hc * hc, axis=-1, keepdims=True) * inv_h
    hn = hc * lax.rsqrt(var + LN_EPS)

    # ---- final Linear (LN affine already folded in); contract hn on its lane axis so the
    #      result is a lane-dense (1, bt) row instead of a masked (bt, 1) column ----
    row = lax.dot_general(fcw_ref[...], hn, (((1,), (1,)), ((), ())),
                          preferred_element_type=jnp.float32)
    out_ref[0] = row + fcb_ref[...]


def _round_up(n, m):
    return ((n + m - 1) // m) * m


def _pick_b_tile(B):
    """Generation-aware default batch tile (v5e: 128, v6e/v7x: 256; 2 tiles on v7x)."""
    try:
        kind = jax.devices()[0].device_kind.lower()
    except Exception:
        kind = ""
    v5e = "v5" in kind
    v7x = ("v7" in kind) or ("7x" in kind)
    big = 128 if v5e else 256
    if B <= 8:
        return 8
    if v7x and B <= 2 * big:
        # keep the grid length even so both v7x TensorCores get a tile
        return _round_up(pl.cdiv(B, 2), 8)
    if B <= big:
        return _round_up(B, 8)
    return big


def lstm_model_forward(x, params, *, b_tile=None):
    """x: (B, T, INPUT_SIZE) float32. Returns (B,) like the PyTorch module (after squeeze).

    Note: for B == 1 PyTorch's .squeeze() returns a 0-d tensor; here the output is (1,).
    """
    w_conv, b_conv, w_ih, w_hh, b_ih, b_hh, ln_w, ln_b, fc_w, fc_b = params
    B, T, C = x.shape
    H = HIDDEN_SIZE
    G4 = 4 * H

    if b_tile is None:
        b_tile = _pick_b_tile(B)
    b_pad = _round_up(B, b_tile)
    grid = (b_pad // b_tile,)

    # ---- fuse Conv1d into the LSTM input projection (both linear) ----
    # Wf[k, i, g] = sum_o w_conv[o, i, k] * w_ih[g, o]
    wf = jnp.einsum('oik,go->kig', w_conv, w_ih)               # (3, C, 4H)
    b_fused = w_ih @ b_conv + b_ih + b_hh                      # (4H,)
    w_hh_t = w_hh.T                                            # (H, 4H)

    # Pre-scale the g-gate block by 2 so tanh(x) = 2*sigmoid(2x) - 1 can share the kernel's
    # single wide sigmoid (no gate-lane padding anymore).
    gate_scale = jnp.concatenate(
        [jnp.ones((H,)), jnp.ones((H,)), jnp.full((H,), 2.0), jnp.ones((H,))]
    ).astype(jnp.float32)                                      # (4H,)
    wf_s = wf * gate_scale                                     # (3, C, 4H)
    b_s = (b_fused * gate_scale).reshape(1, G4)                # (1, 4H)
    whh_s = w_hh_t * gate_scale                                # (H, 4H)

    # ---- fold the LayerNorm affine into the final Linear ----
    fc_w_eff = (ln_w * fc_w[0]).reshape(1, H)                  # (1, H)
    fc_b_eff = (ln_b @ fc_w[0] + fc_b[0]).reshape(1, 1)        # (1, 1)

    # ---- time-major, time-padded (conv pad=1), batch-padded input ----
    x_tm = jnp.pad(jnp.transpose(x, (1, 0, 2)),
                   ((1, 1), (0, b_pad - B), (0, 0)))           # (T+2, b_pad, C)

    out = pl.pallas_call(
        lstm_model_kernel,
        out_shape=jax.ShapeDtypeStruct((grid[0], 1, b_tile), jnp.float32),
        grid=grid,
        in_specs=[
            pl.BlockSpec((T + 2, b_tile, C), lambda i: (0, i, 0)),   # batch-tiled input
            pl.BlockSpec((3, C, G4), lambda i: (0, 0, 0)),           # weights: single block
            pl.BlockSpec((1, G4), lambda i: (0, 0)),
            pl.BlockSpec((H, G4), lambda i: (0, 0)),
            pl.BlockSpec((1, H), lambda i: (0, 0)),
            pl.BlockSpec((1, 1), lambda i: (0, 0)),
        ],
        out_specs=pl.BlockSpec((1, 1, b_tile), lambda i: (i, 0, 0)),
        compiler_params=pltpu.CompilerParams(
            dimension_semantics=("parallel",),                  # megacore / TC sharding
            vmem_limit_bytes=32 * 1024 * 1024,
        ),
    )(x_tm, wf_s, b_s, whh_s, fc_w_eff, fc_b_eff)

    return out.reshape(b_pad)[:B]


def reference_forward(x, params):
    """Pure-JAX reference replicating the PyTorch forward pass."""
    w_conv, b_conv, w_ih, w_hh, b_ih, b_hh, ln_w, ln_b, fc_w, fc_b = params
    B, T, C = x.shape
    H = HIDDEN_SIZE
    xp = jnp.pad(x, ((0, 0), (1, 1), (0, 0)))
    cols = jnp.stack([xp[:, k:k + T, :] for k in range(3)], axis=-1).reshape(B, T, C * 3)
    conv = cols @ w_conv.reshape(H, C * 3).T + b_conv
    h = jnp.zeros((B, H), jnp.float32)
    c = jnp.zeros((B, H), jnp.float32)
    for t in range(T):
        gates = conv[:, t, :] @ w_ih.T + b_ih + h @ w_hh.T + b_hh
        i_g = jax.nn.sigmoid(gates[:, :H])
        f_g = jax.nn.sigmoid(gates[:, H:2 * H])
        g_g = jnp.tanh(gates[:, 2 * H:3 * H])
        o_g = jax.nn.sigmoid(gates[:, 3 * H:])
        c = f_g * c + i_g * g_g
        h = o_g * jnp.tanh(c)
    mean = h.mean(-1, keepdims=True)
    var = ((h - mean) ** 2).mean(-1, keepdims=True)
    hn = (h - mean) / jnp.sqrt(var + LN_EPS) * ln_w + ln_b
    return (hn @ fc_w.T + fc_b)[:, 0]


def init_params(key):
    C, H = INPUT_SIZE, HIDDEN_SIZE
    ks = jax.random.split(key, 9)

    def uni(k, shape, bound):
        return jax.random.uniform(k, shape, jnp.float32, -bound, bound)

    bc = 1.0 / math.sqrt(C * 3)
    bh = 1.0 / math.sqrt(H)
    w_conv = uni(ks[0], (H, C, 3), bc)          # Conv1d weight (out, in, k)
    b_conv = uni(ks[1], (H,), bc)
    w_ih = uni(ks[2], (4 * H, H), bh)           # LSTM weight_ih_l0 (gate order i,f,g,o)
    w_hh = uni(ks[3], (4 * H, H), bh)           # LSTM weight_hh_l0
    b_ih = uni(ks[4], (4 * H,), bh)
    b_hh = uni(ks[5], (4 * H,), bh)
    ln_w = jnp.ones((H,), jnp.float32)
    ln_b = jnp.zeros((H,), jnp.float32)
    fc_w = uni(ks[6], (OUTPUT_SIZE, H), bh)
    fc_b = uni(ks[7], (OUTPUT_SIZE,), bh)
    return (w_conv, b_conv, w_ih, w_hh, b_ih, b_hh, ln_w, ln_b, fc_w, fc_b)


if __name__ == "__main__":
    key = jax.random.PRNGKey(0)
    pkey, xkey, xkey2 = jax.random.split(key, 3)
    params = init_params(pkey)

    # Small shape consistent with the module spec.
    B, T = 2, 8
    x = jax.random.normal(xkey, (B, T, INPUT_SIZE), jnp.float32)
    out = jax.block_until_ready(lstm_model_forward(x, params))
    ref = jax.block_until_ready(reference_forward(x, params))
    assert out.shape == (B,), f"unexpected output shape {out.shape}"
    assert jnp.allclose(out, ref, atol=2e-4, rtol=2e-4), (out, ref)

    # Multi-tile batched path (exercises the batch grid / generation-aware tiling).
    B2 = 192
    x2 = jax.random.normal(xkey2, (B2, T, INPUT_SIZE), jnp.float32)
    out2 = jax.block_until_ready(lstm_model_forward(x2, params))
    ref2 = jax.block_until_ready(reference_forward(x2, params))
    assert out2.shape == (B2,), f"unexpected output shape {out2.shape}"
    assert jnp.allclose(out2, ref2, atol=2e-4, rtol=2e-4), (out2, ref2)

    print("KERNEL_OK")
</pallas_src>

<mosaic_0001>
module attributes {stable_mosaic.version = 11 : i64} {
  func.func @lstm_model_kernel(%arg0: i32, %arg1: memref<10x8x12xf32, #tpu.memory_space<vmem>>, %arg2: memref<3x12x256xf32, #tpu.memory_space<vmem>>, %arg3: memref<1x256xf32, #tpu.memory_space<vmem>>, %arg4: memref<64x256xf32, #tpu.memory_space<vmem>>, %arg5: memref<1x64xf32, #tpu.memory_space<vmem>>, %arg6: memref<1x1xf32, #tpu.memory_space<vmem>>, %arg7: memref<1x1x8xf32, #tpu.memory_space<vmem>>) attributes {dimension_semantics = [#tpu.dimension_semantics<parallel>], iteration_bounds = array<i64: 1>, scalar_prefetch = 0 : i64, scratch_operands = 0 : i64, tpu.core_type = #tpu.core_type<tc>, window_params = [{transform_indices = @transform_0, window_bounds = array<i64: 10, 8, 12>}, {pipeline_mode = #tpu.pipeline_mode<synchronous>, transform_indices = @transform_1, window_bounds = array<i64: 3, 12, 256>}, {pipeline_mode = #tpu.pipeline_mode<synchronous>, transform_indices = @transform_2, window_bounds = array<i64: 1, 256>}, {pipeline_mode = #tpu.pipeline_mode<synchronous>, transform_indices = @transform_3, window_bounds = array<i64: 64, 256>}, {pipeline_mode = #tpu.pipeline_mode<synchronous>, transform_indices = @transform_4, window_bounds = array<i64: 1, 64>}, {pipeline_mode = #tpu.pipeline_mode<synchronous>, transform_indices = @transform_5, window_bounds = array<i64: 1, 1>}, {transform_indices = @transform_6, window_bounds = array<i64: 1, 1, 8>}]} {
    %c0 = arith.constant 0 : index
    %c0_0 = arith.constant 0 : index
    %c0_1 = arith.constant 0 : index
    %0 = vector.load %arg1[%c0, %c0_0, %c0_1] : memref<10x8x12xf32, #tpu.memory_space<vmem>>, vector<10x8x12xf32>
    %1 = vector.shape_cast %0 : vector<10x8x12xf32> to vector<80x12xf32>
    %c0_2 = arith.constant 0 : index
    %c0_3 = arith.constant 0 : index
    %c0_4 = arith.constant 0 : index
    %2 = vector.load %arg2[%c0_2, %c0_3, %c0_4] : memref<3x12x256xf32, #tpu.memory_space<vmem>>, vector<1x12x256xf32>
    %3 = vector.shape_cast %2 : vector<1x12x256xf32> to vector<12x256xf32>
    %cst = arith.constant dense<0.000000e+00> : vector<80x256xf32>
    %4 = tpu.matmul %1, %3, %cst {dimension_numbers = #tpu.dot_dimension_numbers<[1], [0], [0], [1], [0, 0, 1, 1], [], []>} : vector<80x12xf32>, vector<12x256xf32>, vector<80x256xf32> -> vector<80x256xf32>
    %c1 = arith.constant 1 : index
    %c0_5 = arith.constant 0 : index
    %c0_6 = arith.constant 0 : index
    %5 = vector.load %arg2[%c1, %c0_5, %c0_6] : memref<3x12x256xf32, #tpu.memory_space<vmem>>, vector<1x12x256xf32>
    %6 = vector.shape_cast %5 : vector<1x12x256xf32> to vector<12x256xf32>
    %cst_7 = arith.constant dense<0.000000e+00> : vector<80x256xf32>
    %7 = tpu.matmul %1, %6, %cst_7 {dimension_numbers = #tpu.dot_dimension_numbers<[1], [0], [0], [1], [0, 0, 1, 1], [], []>} : vector<80x12xf32>, vector<12x256xf32>, vector<80x256xf32> -> vector<80x256xf32>
    %c2 = arith.constant 2 : index
    %c0_8 = arith.constant 0 : index
    %c0_9 = arith.constant 0 : index
    %8 = vector.load %arg2[%c2, %c0_8, %c0_9] : memref<3x12x256xf32, #tpu.memory_space<vmem>>, vector<1x12x256xf32>
    %9 = vector.shape_cast %8 : vector<1x12x256xf32> to vector<12x256xf32>
    %cst_10 = arith.constant dense<0.000000e+00> : vector<80x256xf32>
    %10 = tpu.matmul %1, %9, %cst_10 {dimension_numbers = #tpu.dot_dimension_numbers<[1], [0], [0], [1], [0, 0, 1, 1], [], []>} : vector<80x12xf32>, vector<12x256xf32>, vector<80x256xf32> -> vector<80x256xf32>
    %11 = vector.extract_strided_slice %4 {offsets = [0, 0], sizes = [64, 256], strides = [1, 1]} : vector<80x256xf32> to vector<64x256xf32>
    %12 = vector.extract_strided_slice %7 {offsets = [8, 0], sizes = [64, 256], strides = [1, 1]} : vector<80x256xf32> to vector<64x256xf32>
    %13 = arith.addf %11, %12 : vector<64x256xf32>
    %14 = vector.extract_strided_slice %10 {offsets = [16, 0], sizes = [64, 256], strides = [1, 1]} : vector<80x256xf32> to vector<64x256xf32>
    %15 = arith.addf %13, %14 : vector<64x256xf32>
    %c0_11 = arith.constant 0 : index
    %c0_12 = arith.constant 0 : index
    %16 = vector.load %arg3[%c0_11, %c0_12] : memref<1x256xf32, #tpu.memory_space<vmem>>, vector<1x256xf32>
    %17 = vector.broadcast %16 : vector<1x256xf32> to vector<64x256xf32>
    %18 = arith.addf %15, %17 : vector<64x256xf32>
    %cst_13 = arith.constant 0.000000e+00 : f32
    %19 = vector.broadcast %cst_13 : f32 to vector<8x64xf32>
    %20 = vector.extract_strided_slice %18 {offsets = [0, 0], sizes = [8, 256], strides = [1, 1]} : vector<64x256xf32> to vector<8x256xf32>
    %21 = arith.negf %20 : vector<8x256xf32>
    %22 = math.exp %21 : vector<8x256xf32>
    %cst_14 = arith.constant 1.000000e+00 : f32
    %23 = vector.broadcast %cst_14 : f32 to vector<8x256xf32>
    %24 = arith.addf %23, %22 : vector<8x256xf32>
    %25 = arith.divf %23, %24 : vector<8x256xf32>
    %26 = vector.extract_strided_slice %25 {offsets = [0, 0], sizes = [8, 64], strides = [1, 1]} : vector<8x256xf32> to vector<8x64xf32>
    %27 = vector.extract_strided_slice %25 {offsets = [0, 64], sizes = [8, 64], strides = [1, 1]} : vector<8x256xf32> to vector<8x64xf32>
    %28 = vector.extract_strided_slice %25 {offsets = [0, 128], sizes = [8, 64], strides = [1, 1]} : vector<8x256xf32> to vector<8x64xf32>
    %cst_15 = arith.constant 2.000000e+00 : f32
    %29 = vector.broadcast %cst_15 : f32 to vector<8x64xf32>
    %30 = arith.mulf %28, %29 : vector<8x64xf32>
    %cst_16 = arith.constant 1.000000e+00 : f32
    %31 = vector.broadcast %cst_16 : f32 to vector<8x64xf32>
    %32 = arith.subf %30, %31 : vector<8x64xf32>
    %33 = vector.extract_strided_slice %25 {offsets = [0, 192], sizes = [8, 64], strides = [1, 1]} : vector<8x256xf32> to vector<8x64xf32>
    %34 = arith.mulf %27, %19 : vector<8x64xf32>
    %35 = arith.mulf %26, %32 : vector<8x64xf32>
    %36 = arith.addf %34, %35 : vector<8x64xf32>
    %37 = math.tanh %36 : vector<8x64xf32>
    %38 = arith.mulf %33, %37 : vector<8x64xf32>
    %39 = vector.extract_strided_slice %18 {offsets = [8, 0], sizes = [8, 256], strides = [1, 1]} : vector<64x256xf32> to vector<8x256xf32>
    %c0_17 = arith.constant 0 : index
    %c0_18 = arith.constant 0 : index
    %40 = vector.load %arg4[%c0_17, %c0_18] : memref<64x256xf32, #tpu.memory_space<vmem>>, vector<64x256xf32>
    %cst_19 = arith.constant dense<0.000000e+00> : vector<8x256xf32>
    %41 = tpu.matmul %38, %40, %cst_19 {dimension_numbers = #tpu.dot_dimension_numbers<[1], [0], [0], [1], [0, 0, 1, 1], [], []>} : vector<8x64xf32>, vector<64x256xf32>, vector<8x256xf32> -> vector<8x256xf32>
    %42 = arith.addf %39, %41 : vector<8x256xf32>
    %43 = arith.negf %42 : vector<8x256xf32>
    %44 = math.exp %43 : vector<8x256xf32>
    %cst_20 = arith.constant 1.000000e+00 : f32
    %45 = vector.broadcast %cst_20 : f32 to vector<8x256xf32>
    %46 = arith.addf %45, %44 : vector<8x256xf32>
    %47 = arith.divf %45, %46 : vector<8x256xf32>
    %48 = vector.extract_strided_slice %47 {offsets = [0, 0], sizes = [8, 64], strides = [1, 1]} : vector<8x256xf32> to vector<8x64xf32>
    %49 = vector.extract_strided_slice %47 {offsets = [0, 64], sizes = [8, 64], strides = [1, 1]} : vector<8x256xf32> to vector<8x64xf32>
    %50 = vector.extract_strided_slice %47 {offsets = [0, 128], sizes = [8, 64], strides = [1, 1]} : vector<8x256xf32> to vector<8x64xf32>
    %cst_21 = arith.constant 2.000000e+00 : f32
    %51 = vector.broadcast %cst_21 : f32 to vector<8x64xf32>
    %52 = arith.mulf %50, %51 : vector<8x64xf32>
    %cst_22 = arith.constant 1.000000e+00 : f32
    %53 = vector.broadcast %cst_22 : f32 to vector<8x64xf32>
    %54 = arith.subf %52, %53 : vector<8x64xf32>
    %55 = vector.extract_strided_slice %47 {offsets = [0, 192], sizes = [8, 64], strides = [1, 1]} : vector<8x256xf32> to vector<8x64xf32>
    %56 = arith.mulf %49, %36 : vector<8x64xf32>
    %57 = arith.mulf %48, %54 : vector<8x64xf32>
    %58 = arith.addf %56, %57 : vector<8x64xf32>
    %59 = math.tanh %58 : vector<8x64xf32>
    %60 = arith.mulf %55, %59 : vector<8x64xf32>
    %61 = vector.extract_strided_slice %18 {offsets = [16, 0], sizes = [8, 256], strides = [1, 1]} : vector<64x256xf32> to vector<8x256xf32>
    %c0_23 = arith.constant 0 : index
    %c0_24 = arith.constant 0 : index
    %62 = vector.load %arg4[%c0_23, %c0_24] : memref<64x256xf32, #tpu.memory_space<vmem>>, vector<64x256xf32>
    %cst_25 = arith.constant dense<0.000000e+00> : vector<8x256xf32>
    %63 = tpu.matmul %60, %62, %cst_25 {dimension_numbers = #tpu.dot_dimension_numbers<[1], [0], [0], [1], [0, 0, 1, 1], [], []>} : vector<8x64xf32>, vector<64x256xf32>, vector<8x256xf32> -> vector<8x256xf32>
    %64 = arith.addf %61, %63 : vector<8x256xf32>
    %65 = arith.negf %64 : vector<8x256xf32>
    %66 = math.exp %65 : vector<8x256xf32>
    %cst_26 = arith.constant 1.000000e+00 : f32
    %67 = vector.broadcast %cst_26 : f32 to vector<8x256xf32>
    %68 = arith.addf %67, %66 : vector<8x256xf32>
    %69 = arith.divf %67, %68 : vector<8x256xf32>
    %70 = vector.extract_strided_slice %69 {offsets = [0, 0], sizes = [8, 64], strides = [1, 1]} : vector<8x256xf32> to vector<8x64xf32>
    %71 = vector.extract_strided_slice %69 {offsets = [0, 64], sizes = [8, 64], strides = [1, 1]} : vector<8x256xf32> to vector<8x64xf32>
    %72 = vector.extract_strided_slice %69 {offsets = [0, 128], sizes = [8, 64], strides = [1, 1]} : vector<8x256xf32> to vector<8x64xf32>
    %cst_27 = arith.constant 2.000000e+00 : f32
    %73 = vector.broadcast %cst_27 : f32 to vector<8x64xf32>
    %74 = arith.mulf %72, %73 : vector<8x64xf32>
    %cst_28 = arith.constant 1.000000e+00 : f32
    %75 = vector.broadcast %cst_28 : f32 to vector<8x64xf32>
    %76 = arith.subf %74, %75 : vector<8x64xf32>
    %77 = vector.extract_strided_slice %69 {offsets = [0, 192], sizes = [8, 64], strides = [1, 1]} : vector<8x256xf32> to vector<8x64xf32>
    %78 = arith.mulf %71, %58 : vector<8x64xf32>
    %79 = arith.mulf %70, %76 : vector<8x64xf32>
    %80 = arith.addf %78, %79 : vector<8x64xf32>
    %81 = math.tanh %80 : vector<8x64xf32>
    %82 = arith.mulf %77, %81 : vector<8x64xf32>
    %83 = vector.extract_strided_slice %18 {offsets = [24, 0], sizes = [8, 256], strides = [1, 1]} : vector<64x256xf32> to vector<8x256xf32>
    %c0_29 = arith.constant 0 : index
    %c0_30 = arith.constant 0 : index
    %84 = vector.load %arg4[%c0_29, %c0_30] : memref<64x256xf32, #tpu.memory_space<vmem>>, vector<64x256xf32>
    %cst_31 = arith.constant dense<0.000000e+00> : vector<8x256xf32>
    %85 = tpu.matmul %82, %84, %cst_31 {dimension_numbers = #tpu.dot_dimension_numbers<[1], [0], [0], [1], [0, 0, 1, 1], [], []>} : vector<8x64xf32>, vector<64x256xf32>, vector<8x256xf32> -> vector<8x256xf32>
    %86 = arith.addf %83, %85 : vector<8x256xf32>
    %87 = arith.negf %86 : vector<8x256xf32>
    %88 = math.exp %87 : vector<8x256xf32>
    %cst_32 = arith.constant 1.000000e+00 : f32
    %89 = vector.broadcast %cst_32 : f32 to vector<8x256xf32>
    %90 = arith.addf %89, %88 : vector<8x256xf32>
    %91 = arith.divf %89, %90 : vector<8x256xf32>
    %92 = vector.extract_strided_slice %91 {offsets = [0, 0], sizes = [8, 64], strides = [1, 1]} : vector<8x256xf32> to vector<8x64xf32>
    %93 = vector.extract_strided_slice %91 {offsets = [0, 64], sizes = [8, 64], strides = [1, 1]} : vector<8x256xf32> to vector<8x64xf32>
    %94 = vector.extract_strided_slice %91 {offsets = [0, 128], sizes = [8, 64], strides = [1, 1]} : vector<8x256xf32> to vector<8x64xf32>
    %cst_33 = arith.constant 2.000000e+00 : f32
    %95 = vector.broadcast %cst_33 : f32 to vector<8x64xf32>
    %96 = arith.mulf %94, %95 : vector<8x64xf32>
    %cst_34 = arith.constant 1.000000e+00 : f32
    %97 = vector.broadcast %cst_34 : f32 to vector<8x64xf32>
    %98 = arith.subf %96, %97 : vector<8x64xf32>
    %99 = vector.extract_strided_slice %91 {offsets = [0, 192], sizes = [8, 64], strides = [1, 1]} : vector<8x256xf32> to vector<8x64xf32>
    %100 = arith.mulf %93, %80 : vector<8x64xf32>
    %101 = arith.mulf %92, %98 : vector<8x64xf32>
    %102 = arith.addf %100, %101 : vector<8x64xf32>
    %103 = math.tanh %102 : vector<8x64xf32>
    %104 = arith.mulf %99, %103 : vector<8x64xf32>
    %105 = vector.extract_strided_slice %18 {offsets = [32, 0], sizes = [8, 256], strides = [1, 1]} : vector<64x256xf32> to vector<8x256xf32>
    %c0_35 = arith.constant 0 : index
    %c0_36 = arith.constant 0 : index
    %106 = vector.load %arg4[%c0_35, %c0_36] : memref<64x256xf32, #tpu.memory_space<vmem>>, vector<64x256xf32>
    %cst_37 = arith.constant dense<0.000000e+00> : vector<8x256xf32>
    %107 = tpu.matmul %104, %106, %cst_37 {dimension_numbers = #tpu.dot_dimension_numbers<[1], [0], [0], [1], [0, 0, 1, 1], [], []>} : vector<8x64xf32>, vector<64x256xf32>, vector<8x256xf32> -> vector<8x256xf32>
    %108 = arith.addf %105, %107 : vector<8x256xf32>
    %109 = arith.negf %108 : vector<8x256xf32>
    %110 = math.exp %109 : vector<8x256xf32>
    %cst_38 = arith.constant 1.000000e+00 : f32
    %111 = vector.broadcast %cst_38 : f32 to vector<8x256xf32>
    %112 = arith.addf %111, %110 : vector<8x256xf32>
    %113 = arith.divf %111, %112 : vector<8x256xf32>
    %114 = vector.extract_strided_slice %113 {offsets = [0, 0], sizes = [8, 64], strides = [1, 1]} : vector<8x256xf32> to vector<8x64xf32>
    %115 = vector.extract_strided_slice %113 {offsets = [0, 64], sizes = [8, 64], strides = [1, 1]} : vector<8x256xf32> to vector<8x64xf32>
    %116 = vector.extract_strided_slice %113 {offsets = [0, 128], sizes = [8, 64], strides = [1, 1]} : vector<8x256xf32> to vector<8x64xf32>
    %cst_39 = arith.constant 2.000000e+00 : f32
    %117 = vector.broadcast %cst_39 : f32 to vector<8x64xf32>
    %118 = arith.mulf %116, %117 : vector<8x64xf32>
    %cst_40 = arith.constant 1.000000e+00 : f32
    %119 = vector.broadcast %cst_40 : f32 to vector<8x64xf32>
    %120 = arith.subf %118, %119 : vector<8x64xf32>
    %121 = vector.extract_strided_slice %113 {offsets = [0, 192], sizes = [8, 64], strides = [1, 1]} : vector<8x256xf32> to vector<8x64xf32>
    %122 = arith.mulf %115, %102 : vector<8x64xf32>
    %123 = arith.mulf %114, %120 : vector<8x64xf32>
    %124 = arith.addf %122, %123 : vector<8x64xf32>
    %125 = math.tanh %124 : vector<8x64xf32>
    %126 = arith.mulf %121, %125 : vector<8x64xf32>
    %127 = vector.extract_strided_slice %18 {offsets = [40, 0], sizes = [8, 256], strides = [1, 1]} : vector<64x256xf32> to vector<8x256xf32>
    %c0_41 = arith.constant 0 : index
    %c0_42 = arith.constant 0 : index
    %128 = vector.load %arg4[%c0_41, %c0_42] : memref<64x256xf32, #tpu.memory_space<vmem>>, vector<64x256xf32>
    %cst_43 = arith.constant dense<0.000000e+00> : vector<8x256xf32>
    %129 = tpu.matmul %126, %128, %cst_43 {dimension_numbers = #tpu.dot_dimension_numbers<[1], [0], [0], [1], [0, 0, 1, 1], [], []>} : vector<8x64xf32>, vector<64x256xf32>, vector<8x256xf32> -> vector<8x256xf32>
    %130 = arith.addf %127, %129 : vector<8x256xf32>
    %131 = arith.negf %130 : vector<8x256xf32>
    %132 = math.exp %131 : vector<8x256xf32>
    %cst_44 = arith.constant 1.000000e+00 : f32
    %133 = vector.broadcast %cst_44 : f32 to vector<8x256xf32>
    %134 = arith.addf %133, %132 : vector<8x256xf32>
    %135 = arith.divf %133, %134 : vector<8x256xf32>
    %136 = vector.extract_strided_slice %135 {offsets = [0, 0], sizes = [8, 64], strides = [1, 1]} : vector<8x256xf32> to vector<8x64xf32>
    %137 = vector.extract_strided_slice %135 {offsets = [0, 64], sizes = [8, 64], strides = [1, 1]} : vector<8x256xf32> to vector<8x64xf32>
    %138 = vector.extract_strided_slice %135 {offsets = [0, 128], sizes = [8, 64], strides = [1, 1]} : vector<8x256xf32> to vector<8x64xf32>
    %cst_45 = arith.constant 2.000000e+00 : f32
    %139 = vector.broadcast %cst_45 : f32 to vector<8x64xf32>
    %140 = arith.mulf %138, %139 : vector<8x64xf32>
    %cst_46 = arith.constant 1.000000e+00 : f32
    %141 = vector.broadcast %cst_46 : f32 to vector<8x64xf32>
    %142 = arith.subf %140, %141 : vector<8x64xf32>
    %143 = vector.extract_strided_slice %135 {offsets = [0, 192], sizes = [8, 64], strides = [1, 1]} : vector<8x256xf32> to vector<8x64xf32>
    %144 = arith.mulf %137, %124 : vector<8x64xf32>
    %145 = arith.mulf %136, %142 : vector<8x64xf32>
    %146 = arith.addf %144, %145 : vector<8x64xf32>
    %147 = math.tanh %146 : vector<8x64xf32>
    %148 = arith.mulf %143, %147 : vector<8x64xf32>
    %149 = vector.extract_strided_slice %18 {offsets = [48, 0], sizes = [8, 256], strides = [1, 1]} : vector<64x256xf32> to vector<8x256xf32>
    %c0_47 = arith.constant 0 : index
    %c0_48 = arith.constant 0 : index
    %150 = vector.load %arg4[%c0_47, %c0_48] : memref<64x256xf32, #tpu.memory_space<vmem>>, vector<64x256xf32>
    %cst_49 = arith.constant dense<0.000000e+00> : vector<8x256xf32>
    %151 = tpu.matmul %148, %150, %cst_49 {dimension_numbers = #tpu.dot_dimension_numbers<[1], [0], [0], [1], [0, 0, 1, 1], [], []>} : vector<8x64xf32>, vector<64x256xf32>, vector<8x256xf32> -> vector<8x256xf32>
    %152 = arith.addf %149, %151 : vector<8x256xf32>
    %153 = arith.negf %152 : vector<8x256xf32>
    %154 = math.exp %153 : vector<8x256xf32>
    %cst_50 = arith.constant 1.000000e+00 : f32
    %155 = vector.broadcast %cst_50 : f32 to vector<8x256xf32>
    %156 = arith.addf %155, %154 : vector<8x256xf32>
    %157 = arith.divf %155, %156 : vector<8x256xf32>
    %158 = vector.extract_strided_slice %157 {offsets = [0, 0], sizes = [8, 64], strides = [1, 1]} : vector<8x256xf32> to vector<8x64xf32>
    %159 = vector.extract_strided_slice %157 {offsets = [0, 64], sizes = [8, 64], strides = [1, 1]} : vector<8x256xf32> to vector<8x64xf32>
    %160 = vector.extract_strided_slice %157 {offsets = [0, 128], sizes = [8, 64], strides = [1, 1]} : vector<8x256xf32> to vector<8x64xf32>
    %cst_51 = arith.constant 2.000000e+00 : f32
    %161 = vector.broadcast %cst_51 : f32 to vector<8x64xf32>
    %162 = arith.mulf %160, %161 : vector<8x64xf32>
    %cst_52 = arith.constant 1.000000e+00 : f32
    %163 = vector.broadcast %cst_52 : f32 to vector<8x64xf32>
    %164 = arith.subf %162, %163 : vector<8x64xf32>
    %165 = vector.extract_strided_slice %157 {offsets = [0, 192], sizes = [8, 64], strides = [1, 1]} : vector<8x256xf32> to vector<8x64xf32>
    %166 = arith.mulf %159, %146 : vector<8x64xf32>
    %167 = arith.mulf %158, %164 : vector<8x64xf32>
    %168 = arith.addf %166, %167 : vector<8x64xf32>
    %169 = math.tanh %168 : vector<8x64xf32>
    %170 = arith.mulf %165, %169 : vector<8x64xf32>
    %171 = vector.extract_strided_slice %18 {offsets = [56, 0], sizes = [8, 256], strides = [1, 1]} : vector<64x256xf32> to vector<8x256xf32>
    %c0_53 = arith.constant 0 : index
    %c0_54 = arith.constant 0 : index
    %172 = vector.load %arg4[%c0_53, %c0_54] : memref<64x256xf32, #tpu.memory_space<vmem>>, vector<64x256xf32>
    %cst_55 = arith.constant dense<0.000000e+00> : vector<8x256xf32>
    %173 = tpu.matmul %170, %172, %cst_55 {dimension_numbers = #tpu.dot_dimension_numbers<[1], [0], [0], [1], [0, 0, 1, 1], [], []>} : vector<8x64xf32>, vector<64x256xf32>, vector<8x256xf32> -> vector<8x256xf32>
    %174 = arith.addf %171, %173 : vector<8x256xf32>
    %175 = arith.negf %174 : vector<8x256xf32>
    %176 = math.exp %175 : vector<8x256xf32>
    %cst_56 = arith.constant 1.000000e+00 : f32
    %177 = vector.broadcast %cst_56 : f32 to vector<8x256xf32>
    %178 = arith.addf %177, %176 : vector<8x256xf32>
    %179 = arith.divf %177, %178 : vector<8x256xf32>
    %180 = vector.extract_strided_slice %179 {offsets = [0, 0], sizes = [8, 64], strides = [1, 1]} : vector<8x256xf32> to vector<8x64xf32>
    %181 = vector.extract_strided_slice %179 {offsets = [0, 64], sizes = [8, 64], strides = [1, 1]} : vector<8x256xf32> to vector<8x64xf32>
    %182 = vector.extract_strided_slice %179 {offsets = [0, 128], sizes = [8, 64], strides = [1, 1]} : vector<8x256xf32> to vector<8x64xf32>
    %cst_57 = arith.constant 2.000000e+00 : f32
    %183 = vector.broadcast %cst_57 : f32 to vector<8x64xf32>
    %184 = arith.mulf %182, %183 : vector<8x64xf32>
    %cst_58 = arith.constant 1.000000e+00 : f32
    %185 = vector.broadcast %cst_58 : f32 to vector<8x64xf32>
    %186 = arith.subf %184, %185 : vector<8x64xf32>
    %187 = vector.extract_strided_slice %179 {offsets = [0, 192], sizes = [8, 64], strides = [1, 1]} : vector<8x256xf32> to vector<8x64xf32>
    %188 = arith.mulf %181, %168 : vector<8x64xf32>
    %189 = arith.mulf %180, %186 : vector<8x64xf32>
    %190 = arith.addf %188, %189 : vector<8x64xf32>
    %191 = math.tanh %190 : vector<8x64xf32>
    %192 = arith.mulf %187, %191 : vector<8x64xf32>
    %cst_59 = arith.constant dense<0.000000e+00> : vector<8xf32>
    %193 = vector.multi_reduction <add>, %192, %cst_59 [1] : vector<8x64xf32> to vector<8xf32>
    %194 = vector.shape_cast %193 : vector<8xf32> to vector<8x1xf32>
    %cst_60 = arith.constant 1.562500e-02 : f32
    %195 = vector.broadcast %cst_60 : f32 to vector<8x1xf32>
    %196 = arith.mulf %194, %195 : vector<8x1xf32>
    %197 = vector.broadcast %196 : vector<8x1xf32> to vector<8x64xf32>
    %198 = arith.subf %192, %197 : vector<8x64xf32>
    %199 = arith.mulf %198, %198 : vector<8x64xf32>
    %cst_61 = arith.constant dense<0.000000e+00> : vector<8xf32>
    %200 = vector.multi_reduction <add>, %199, %cst_61 [1] : vector<8x64xf32> to vector<8xf32>
    %201 = vector.shape_cast %200 : vector<8xf32> to vector<8x1xf32>
    %cst_62 = arith.constant 1.562500e-02 : f32
    %202 = vector.broadcast %cst_62 : f32 to vector<8x1xf32>
    %203 = arith.mulf %201, %202 : vector<8x1xf32>
    %cst_63 = arith.constant 9.99999974E-6 : f32
    %204 = vector.broadcast %cst_63 : f32 to vector<8x1xf32>
    %205 = arith.addf %203, %204 : vector<8x1xf32>
    %206 = math.rsqrt %205 : vector<8x1xf32>
    %207 = vector.broadcast %206 : vector<8x1xf32> to vector<8x64xf32>
    %208 = arith.mulf %198, %207 : vector<8x64xf32>
    %c0_64 = arith.constant 0 : index
    %c0_65 = arith.constant 0 : index
    %209 = vector.load %arg5[%c0_64, %c0_65] : memref<1x64xf32, #tpu.memory_space<vmem>>, vector<1x64xf32>
    %cst_66 = arith.constant dense<0.000000e+00> : vector<1x8xf32>
    %210 = tpu.matmul %209, %208, %cst_66 {dimension_numbers = #tpu.dot_dimension_numbers<[1], [1], [0], [0], [0, 0, 1, 0], [], []>} : vector<1x64xf32>, vector<8x64xf32>, vector<1x8xf32> -> vector<1x8xf32>
    %c0_67 = arith.constant 0 : index
    %c0_68 = arith.constant 0 : index
    %211 = vector.load %arg6[%c0_67, %c0_68] : memref<1x1xf32, #tpu.memory_space<vmem>>, vector<1x1xf32>
    %212 = vector.broadcast %211 : vector<1x1xf32> to vector<1x8xf32>
    %213 = arith.addf %210, %212 : vector<1x8xf32>
    %c0_69 = arith.constant 0 : index
    %c0_70 = arith.constant 0 : index
    %c0_71 = arith.constant 0 : index
    %214 = vector.load %arg7[%c0_69, %c0_70, %c0_71] : memref<1x1x8xf32, #tpu.memory_space<vmem>>, vector<1x1x8xf32>
    %215 = vector.shape_cast %214 : vector<1x1x8xf32> to vector<1x8xf32>
    %216 = vector.shape_cast %213 : vector<1x8xf32> to vector<1x1x8xf32>
    tpu.vector_store %arg7[%c0_69, %c0_70, %c0_71], %216 {strides = array<i32>} : memref<1x1x8xf32, #tpu.memory_space<vmem>>, vector<1x1x8xf32>,
    return
  }
  func.func @transform_0(%arg0: i32) -> (i32, i32, i32) {
    %c0_i32 = arith.constant 0 : i32
    %c0_i32_0 = arith.constant 0 : i32
    %c0_i32_1 = arith.constant 0 : i32
    return %c0_i32, %arg0, %c0_i32_0 : i32, i32, i32
  }
  func.func @transform_1(%arg0: i32) -> (i32, i32, i32) {
    %c0_i32 = arith.constant 0 : i32
    %c0_i32_0 = arith.constant 0 : i32
    %c0_i32_1 = arith.constant 0 : i32
    %c0_i32_2 = arith.constant 0 : i32
    return %c0_i32, %c0_i32_0, %c0_i32_1 : i32, i32, i32
  }
  func.func @transform_2(%arg0: i32) -> (i32, i32) {
    %c0_i32 = arith.constant 0 : i32
    %c0_i32_0 = arith.constant 0 : i32
    %c0_i32_1 = arith.constant 0 : i32
    return %c0_i32, %c0_i32_0 : i32, i32
  }
  func.func @transform_3(%arg0: i32) -> (i32, i32) {
    %c0_i32 = arith.constant 0 : i32
    %c0_i32_0 = arith.constant 0 : i32
    %c0_i32_1 = arith.constant 0 : i32
    return %c0_i32, %c0_i32_0 : i32, i32
  }
  func.func @transform_4(%arg0: i32) -> (i32, i32) {
    %c0_i32 = arith.constant 0 : i32
    %c0_i32_0 = arith.constant 0 : i32
    %c0_i32_1 = arith.constant 0 : i32
    return %c0_i32, %c0_i32_0 : i32, i32
  }
  func.func @transform_5(%arg0: i32) -> (i32, i32) {
    %c0_i32 = arith.constant 0 : i32
    %c0_i32_0 = arith.constant 0 : i32
    %c0_i32_1 = arith.constant 0 : i32
    return %c0_i32, %c0_i32_0 : i32, i32
  }
  func.func @transform_6(%arg0: i32) -> (i32, i32, i32) {
    %c0_i32 = arith.constant 0 : i32
    %c0_i32_0 = arith.constant 0 : i32
    %c0_i32_1 = arith.constant 0 : i32
    return %arg0, %c0_i32, %c0_i32_0 : i32, i32, i32
  }
}

</mosaic_0001>

<bundles_post_ra>
// kernel: tpu_custom_call.1
= control target key start
LH: loop header
LB: loop body
LE: loop exit
PB: predicated region body
PF: predicated region fallthrough
CT: control target
= control target key end

     0   :  { %s2116_s0 = inlined_call_operand.hbm [shape: f32[10,8,12], index: 0, kind: input, shape index: {}]   ;;  %s2117_s1 = inlined_call_operand.hbm [shape: f32[3,12,256], index: 1, kind: input, shape index: {}]   ;;  %s2118_s2 = inlined_call_operand.vmem [shape: f32[1,256], index: 2, kind: input, shape index: {}]   ;;  %s2119_s3 = inlined_call_operand.hbm [shape: f32[64,256], index: 3, kind: input, shape index: {}]   ;;  %s2120_s4 = inlined_call_operand.vmem [shape: f32[1,64], index: 4, kind: input, shape index: {}]   ;;  %s2121_s5 = inlined_call_operand.<no memory space> [shape: f32[1,1], index: 5, kind: input, shape index: {}]   ;;  %s2122_s6 = inlined_call_operand.hbm [shape: f32[1,1,8], index: 6, kind: output, shape index: {}]  }
   0x1   :  { %v11_v0 = vstv %s2121_s5 }
   0x2   :  { %12 = vst [vmem:[#allocation2] sm:$0x1] %v11_v0 }
   0x3   :  { %13 = vsyncpa [#allocation4], 0 }
   0x4   :  { %14 = vsyncpa [#allocation7], 0 }
   0x5   :  { %15 = vsyncpa [#allocation5], 0  ;;  %s1697_s23 = smov [#allocation6]  }
   0x6   :  { %s33_s24 = sshll.u32 %s1697_s23, 4  ;;  %s34_s24 = int_to_ptr.vmem [resolvable:$true] %s33_s24 }
   0x7   :  { %s1619_s25 = scalar_lea.vmem %s34_s24, 1536  ;;  %p1624_p1 = scmp.lt.s32.totalorder %s34_s24, %s34_s24 }
   0x8   :  { %p1620_p0 = scmp.ne.s32.totalorder %s34_s24, %s1619_s25  ;;  %p1625_p2 = scmp.lt.s32.totalorder %s1619_s25, %s1619_s25 }
   0xa   :  { %p1626_p3 = por %p1625_p2, %p1624_p1 }
   0xc   :  { %p1627_p4 = pnand %p1626_p3, %p1620_p0 }
   0xe   :  { %1630 = shalt.err (!%p1627_p4)
}
   0xf   :  { %s1698_s26 = smov 256   ;;  %s1699_s27 = smov 16  }
  0x10   :  { %39 = dma.hbm_to_vmem [thread:$0]  %s2117_s1, 1536, %s34_s24, [#allocation7], %s1698_s26, %s1698_s26, %s1699_s27  }
  0x11   :  { %s1700_s5 = smov [#allocation3]  }
  0x12   :  { %s21_s30 = sshll.u32 %s1700_s5, 4  ;;  %s22_s30 = int_to_ptr.vmem [resolvable:$true] %s21_s30 }
  0x13   :  { %s1639_s7 = scalar_lea.vmem %s22_s30, 1280  ;;  %p1644_p6 = scmp.lt.s32.totalorder %s22_s30, %s22_s30 }
  0x14   :  { %p1640_p5 = scmp.ne.s32.totalorder %s22_s30, %s1639_s7  ;;  %p1645_p7 = scmp.lt.s32.totalorder %s1639_s7, %s1639_s7 }
  0x16   :  { %p1646_p8 = por %p1645_p7, %p1644_p6 }
  0x18   :  { %p1647_p9 = pnand %p1646_p8, %p1640_p5 }
  0x1a   :  { %1650 = shalt.err (!%p1647_p9)
}
  0x1b   :  { %s1701_s8 = smov 128   ;;  %s1702_s9 = smov 8  }
  0x1c   :  { %27 = dma.hbm_to_vmem [thread:$0]  %s2116_s0, 1280, %s22_s30, [#allocation4], %s1701_s8, %s1701_s8, %s1702_s9  }
  0x1d   :  { %s1703_s12 = smov [#allocation8]  }
  0x1e   :  { %s47_s13 = sshll.u32 %s1703_s12, 4  ;;  %s48_s13 = int_to_ptr.vmem [resolvable:$true] %s47_s13 }
  0x1f   :  { %s1659_s1 = scalar_lea.vmem %s48_s13, 2048  ;;  %p1664_p11 = scmp.lt.s32.totalorder %s48_s13, %s48_s13 }
  0x20   :  { %p1660_p10 = scmp.ne.s32.totalorder %s48_s13, %s1659_s1  ;;  %p1665_p12 = scmp.lt.s32.totalorder %s1659_s1, %s1659_s1 }
  0x22   :  { %p1666_p13 = por %p1665_p12, %p1664_p11 }
  0x24   :  { %p1667_p0 = pnand %p1666_p13, %p1660_p10 }
  0x26   :  { %1670 = shalt.err (!%p1667_p0)
}
  0x27   :  { %53 = dma.hbm_to_vmem [thread:$0]  %s2119_s3, 2048, %s48_s13, [#allocation7], %s1698_s26, %s1698_s26, %s1699_s27  }
  0x28   :  { %1691 = dma.done.wait [#allocation4], 1280  }
  0x29   :  { %1692 = vsyncadd [#allocation4], 4294966016 }
  0x2a   :  { %1693 = dma.done.wait [#allocation7], 3584  }
  0x2b   :  { %1694 = vsyncadd [#allocation7], 4294963712  ;;  %v1704_v1 = vmov 0.0   ;;  %vm112_vm0 = vcmask 1043456   ;;  %v80_v2 = vld [vmem:[#allocation6 + $0x18] sm:$0xf] }
  0x2c   :  { %183 = vmatprep.mubr.f32.mxu0 %v1704_v1  ;;  %315 = vmatprep.mubr.f32.mxu1 %v1704_v1  ;;  %v244_v3 = vld [vmem:[#allocation6 + $0x38] sm:$0xf]  ;;  %v79_v4 = vld [vmem:[#allocation6 + $0x10] sm:$0xf]  ;;  %v78_v6 = vld [vmem:[#allocation6 + $0x8] sm:$0xff]  ;;  %vm81_vm1 = vcmask 97280  }
  0x2d   :  { %1439 = vmatprep.subr.msk.mxu0 %vm112_vm0, %v80_v2  ;;  %1451 = vmatprep.subr.msk.mxu1 %vm112_vm0, %v244_v3  ;;  %v243_v5 = vld [vmem:[#allocation6 + $0x30] sm:$0xf]  ;;  %v242_v7 = vld [vmem:[#allocation6 + $0x28] sm:$0xff]  ;;  %v77_v8 = vld [vmem:[#allocation6] sm:$0xff]  ;;  %vm606_vm2 = vcmask 523264   ;;  %vm1706_vm3 = vmmov 0  }
  0x2e   :  { %1440 = vmatpush1.msk.msra.mxu0 %vm112_vm0, %v79_v4  ;;  %1452 = vmatpush1.msk.msra.mxu1 %vm112_vm0, %v243_v5  ;;  %v241_v9 = vld [vmem:[#allocation6 + $0x20] sm:$0xff]  ;;  %v1762_v10 = vld [vmem:[#allocation3] sm:$0xff]  ;;  %v376_v11 = vld [vmem:[#allocation6 + $0x58] sm:$0xf]  ;;  %s1708_s18 = smov [#allocation9]   ;;  %vm1421_vm4 = vcmask 57344  }
  0x2f   :  { %149 = vmatprep.subr.mxu0 %v78_v6  ;;  %281 = vmatprep.subr.mxu1 %v242_v7  ;;  %v375_v12 = vld [vmem:[#allocation6 + $0x50] sm:$0xf]  ;;  %v374_v13 = vld [vmem:[#allocation6 + $0x48] sm:$0xff]  ;;  %v68_v14 = vld [vmem:[#allocation3 + $0x8] sm:$0xff]  ;;  %s1429_s19 = sshll.u32 %s1708_s18, 4  ;;  %s1430_s19 = int_to_ptr.vmem [resolvable:$true] %s1429_s19 }
  0x30   :  { %150 = vmatpush1.msra.mxu0 %v77_v8  ;;  %282 = vmatpush1.msra.mxu1 %v241_v9  ;;  %v373_v15 = vld [vmem:[#allocation6 + $0x40] sm:$0xff]  ;;  %v70_v17 = vld [vmem:[#allocation3 + $0x18] sm:$0xff]  ;;  %v71_v18 = vld [vmem:[#allocation3 + $0x20] sm:$0xff]  ;;  %s1671_s20 = scalar_lea.vmem %s1430_s19, 16  ;;  %s1675_s21 = scalar_lea.vmem %s1430_s19, 32 }
  0x31   :  { %1441 = vmatmul.mubr.msk.f32.vlgmr.msra.gmra.mxu0 %vm81_vm1, %v1762_v10  ;;  %1453 = vmatmul.mubr.msk.f32.vlgmr.msra.gmra.mxu1 %vm81_vm1, %v1762_v10  ;;  %v69_v16 = vld [vmem:[#allocation3 + $0x10] sm:$0xff]  ;;  %v72_v19 = vld [vmem:[#allocation3 + $0x28] sm:$0xff]  ;;  %v74_v21 = vld [vmem:[#allocation3 + $0x38] sm:$0xff]  ;;  %p1672_p1 = scmp.ne.s32.totalorder %s1430_s19, %s1671_s20  ;;  %p1676_p2 = scmp.lt.s32.totalorder %s1430_s19, %s1430_s19 }
  0x32   :  { %1463 = vmatprep.subr.msk.mxu0 %vm112_vm0, %v376_v11  ;;  %189 = vmatprep.mubr.f32.mxu0 %v1704_v1  ;;  %v73_v20 = vld [vmem:[#allocation3 + $0x30] sm:$0xff]  ;;  %v75_v22 = vld [vmem:[#allocation3 + $0x40] sm:$0xff]  ;;  %v76_v23 = vld [vmem:[#allocation3 + $0x48] sm:$0xff]  ;;  %v538_v11 = vlaneseq  ;;  %p1677_p3 = scmp.lt.s32.totalorder %s1675_s21, %s1671_s20 }
  0x33   :  { %1464 = vmatpush1.msk.msra.mxu0 %vm112_vm0, %v375_v12  ;;  %319 = vmatprep.mubr.f32.mxu1 %v1704_v1 }
  0x34   :  { %413 = vmatprep.subr.mxu0 %v374_v13  ;;  %p1678_p4 = por %p1677_p3, %p1676_p2 }
  0x35   :  { %1442 = vmatmul.mubr.msk.f32.gmra.mxu0 %vm81_vm1, %v68_v14  ;;  %1454 = vmatmul.mubr.msk.f32.gmra.mxu1 %vm81_vm1, %v68_v14 }
  0x36   :  { %195 = vmatprep.mubr.f32.mxu0 %v1704_v1  ;;  %325 = vmatprep.mubr.f32.mxu1 %v1704_v1  ;;  %p1679_p5 = pnand %p1678_p4, %p1672_p1 }
  0x37   :  { %414 = vmatpush1.msra.mxu0 %v373_v15 }
  0x39   :  { %1443 = vmatmul.mubr.msk.f32.gmra.mxu0 %vm81_vm1, %v69_v16  ;;  %1455 = vmatmul.mubr.msk.f32.gmra.mxu1 %vm81_vm1, %v69_v16 }
  0x3a   :  { %201 = vmatprep.mubr.f32.mxu0 %v1704_v1  ;;  %331 = vmatprep.mubr.f32.mxu1 %v1704_v1 }
  0x3d   :  { %1444 = vmatmul.mubr.msk.f32.gmra.mxu0 %vm81_vm1, %v70_v17  ;;  %1456 = vmatmul.mubr.msk.f32.gmra.mxu1 %vm81_vm1, %v70_v17 }
  0x3e   :  { %207 = vmatprep.mubr.f32.mxu0 %v1704_v1  ;;  %337 = vmatprep.mubr.f32.mxu1 %v1704_v1 }
  0x41   :  { %1445 = vmatmul.mubr.msk.f32.gmra.mxu0 %vm81_vm1, %v71_v18  ;;  %1457 = vmatmul.mubr.msk.f32.gmra.mxu1 %vm81_vm1, %v71_v18 }
  0x42   :  { %213 = vmatprep.mubr.f32.mxu0 %v1704_v1  ;;  %343 = vmatprep.mubr.f32.mxu1 %v1704_v1 }
  0x45   :  { %1446 = vmatmul.mubr.msk.f32.gmra.mxu0 %vm81_vm1, %v72_v19  ;;  %1458 = vmatmul.mubr.msk.f32.gmra.mxu1 %vm81_vm1, %v72_v19 }
  0x46   :  { %219 = vmatprep.mubr.f32.mxu0 %v1704_v1  ;;  %349 = vmatprep.mubr.f32.mxu1 %v1704_v1 }
  0x49   :  { %1447 = vmatmul.mubr.msk.f32.gmra.mxu0 %vm81_vm1, %v73_v20  ;;  %1459 = vmatmul.mubr.msk.f32.gmra.mxu1 %vm81_vm1, %v73_v20 }
  0x4a   :  { %225 = vmatprep.mubr.f32.mxu0 %v1704_v1  ;;  %355 = vmatprep.mubr.f32.mxu1 %v1704_v1 }
  0x4d   :  { %1448 = vmatmul.mubr.msk.f32.gmra.mxu0 %vm81_vm1, %v74_v21  ;;  %1460 = vmatmul.mubr.msk.f32.gmra.mxu1 %vm81_vm1, %v74_v21 }
  0x4e   :  { %231 = vmatprep.mubr.f32.mxu0 %v1704_v1  ;;  %361 = vmatprep.mubr.f32.mxu1 %v1704_v1 }
  0x51   :  { %1449 = vmatmul.mubr.msk.f32.gmra.mxu0 %vm81_vm1, %v75_v22  ;;  %1461 = vmatmul.mubr.msk.f32.gmra.mxu1 %vm81_vm1, %v75_v22 }
  0x52   :  { %235 = vmatprep.mubr.f32.mxu0 %v1704_v1  ;;  %367 = vmatprep.mubr.f32.mxu1 %v1704_v1 }
  0x55   :  { %1450 = vmatmul.mubr.msk.f32.gmra.mxu0 %vm81_vm1, %v76_v23  ;;  %1462 = vmatmul.mubr.msk.f32.gmra.mxu1 %vm81_vm1, %v76_v23 }
  0x56   :  { %447 = vmatprep.mubr.f32.mxu0 %v1704_v1  ;;  %673 = vmatprep.mubr.f32.mxu1 %v1704_v1 }
  0x59   :  { %1465 = vmatmul.mubr.msk.f32.vlgmr.msra.gmra.mxu0 %vm81_vm1, %v1762_v10 }
  0x5a   :  { %451 = vmatprep.mubr.f32.mxu0 %v1704_v1 }
  0x5d   :  { %1466 = vmatmul.mubr.msk.f32.gmra.mxu0 %vm81_vm1, %v68_v14 }
  0x5e   :  { %455 = vmatprep.mubr.f32.mxu0 %v1704_v1 }
  0x61   :  { %1467 = vmatmul.mubr.msk.f32.gmra.mxu0 %vm81_vm1, %v69_v16  ;;  %v1861_v16 = vshrl.u32 %v538_v11, 7 }
  0x62   :  { %461 = vmatprep.mubr.f32.mxu0 %v1704_v1 }
  0x65   :  { %1468 = vmatmul.mubr.msk.f32.gmra.mxu0 %vm81_vm1, %v70_v17 }
  0x66   :  { %467 = vmatprep.mubr.f32.mxu0 %v1704_v1 }
  0x69   :  { %1469 = vmatmul.mubr.msk.f32.gmra.mxu0 %vm81_vm1, %v71_v18 }
  0x6a   :  { %473 = vmatprep.mubr.f32.mxu0 %v1704_v1 }
  0x6d   :  { %1470 = vmatmul.mubr.msk.f32.gmra.mxu0 %vm81_vm1, %v72_v19  ;;  %v540_v19 = vsub.s32 0, %v1861_v16 }
  0x6e   :  { %479 = vmatprep.mubr.f32.mxu0 %v1704_v1 }
  0x71   :  { %1471 = vmatmul.mubr.msk.f32.gmra.mxu0 %vm81_vm1, %v73_v20 }
  0x72   :  { %485 = vmatprep.mubr.f32.mxu0 %v1704_v1 }
  0x75   :  { %1472 = vmatmul.mubr.msk.f32.gmra.mxu0 %vm81_vm1, %v74_v21  ;;  %v536_v21 = vld [vmem:[%s2118_s2] sm:$0x3]  ;;  %s1705_s2 = smov 64  }
  0x76   :  { %491 = vmatprep.mubr.f32.mxu0 %v1704_v1 }
  0x79   :  { %1473 = vmatmul.mubr.msk.f32.gmra.mxu0 %vm81_vm1, %v75_v22  ;;  %v544_v22 = vsub.s32 1, %v1861_v16 }
  0x7a   :  { %497 = vmatprep.mubr.f32.mxu0 %v1704_v1 }
  0x7d   :  { %1474 = vmatmul.mubr.msk.f32.gmra.mxu0 %vm81_vm1, %v76_v23 }
  0x7e   :  { %976 = vmatprep.mubr.f32.mxu0 %v1704_v1 }
  0xf1   :  { %v1829_v24 = vpop.f32.mrf.mxu0  ;;  %v317_v25 = vpop.f32.mrf.mxu1 }
  0xf3   :  { %v1831_v26 = vpop.f32.mrf.mxu0  ;;  %v318_v27 = vpop.f32.mrf.mxu1 }
  0xf4   :  { %v541_v27 = vrot.slane %v536_v21, %v540_v19 }
  0xf5   :  { %v191_v28 = vpop.f32.mrf.mxu0  ;;  %v321_v29 = vpop.f32.mrf.mxu1 }
  0xf6   :  { %v504_v25 = vadd.f32 %v321_v29, %v1829_v24 }
  0xf7   :  { %v193_v30 = vpop.f32.mrf.mxu0  ;;  %v323_v31 = vpop.f32.mrf.mxu1 }
  0xf9   :  { %v197_v32 = vpop.f32.mrf.mxu0  ;;  %v327_v33 = vpop.f32.mrf.mxu1 }
  0xfa   :  { %v1833_v34 = vadd.f32 %v327_v33, %v191_v28  ;;  %v545_v33 = vrot.slane %v536_v21, %v544_v22 }
  0xfb   :  { %v199_v35 = vpop.f32.mrf.mxu0  ;;  %v329_v36 = vpop.f32.mrf.mxu1 }
  0xfc   :  { %v1835_v37 = vadd.f32 %v329_v36, %v193_v30  ;;  %v505_v30 = vadd.f32 %v323_v31, %v1831_v26 }
  0xfd   :  { %v203_v38 = vpop.f32.mrf.mxu0  ;;  %v333_v39 = vpop.f32.mrf.mxu1 }
  0xfe   :  { %v1837_v40 = vadd.f32 %v333_v39, %v197_v32 }
  0xff   :  { %v205_v41 = vpop.f32.mrf.mxu0  ;;  %v335_v42 = vpop.f32.mrf.mxu1 }
 0x100   :  { %v1839_v43 = vadd.f32 %v335_v42, %v199_v35 }
 0x101   :  { %v209_v44 = vpop.f32.mrf.mxu0  ;;  %v339_v45 = vpop.f32.mrf.mxu1 }
 0x102   :  { %v1841_v46 = vadd.f32 %v339_v45, %v203_v38 }
 0x103   :  { %v211_v47 = vpop.f32.mrf.mxu0  ;;  %v341_v48 = vpop.f32.mrf.mxu1 }
 0x104   :  { %v1843_v49 = vadd.f32 %v341_v48, %v205_v41 }
 0x105   :  { %v215_v50 = vpop.f32.mrf.mxu0  ;;  %v345_v51 = vpop.f32.mrf.mxu1 }
 0x106   :  { %v1845_v52 = vadd.f32 %v345_v51, %v209_v44 }
 0x107   :  { %v217_v53 = vpop.f32.mrf.mxu0  ;;  %v347_v54 = vpop.f32.mrf.mxu1 }
 0x108   :  { %v1847_v55 = vadd.f32 %v347_v54, %v211_v47 }
 0x109   :  { %v221_v56 = vpop.f32.mrf.mxu0  ;;  %v351_v57 = vpop.f32.mrf.mxu1 }
 0x10a   :  { %v1849_v58 = vadd.f32 %v351_v57, %v215_v50 }
 0x10b   :  { %v223_v59 = vpop.f32.mrf.mxu0  ;;  %v353_v60 = vpop.f32.mrf.mxu1 }
 0x10c   :  { %v1851_v61 = vadd.f32 %v353_v60, %v217_v53 }
 0x10d   :  { %v227_v62 = vpop.f32.mrf.mxu0  ;;  %v357_v63 = vpop.f32.mrf.mxu1 }
 0x10e   :  { %v1853_v0 = vadd.f32 %v357_v63, %v221_v56 }
 0x10f   :  { %v229_v2 = vpop.f32.mrf.mxu0  ;;  %v359_v3 = vpop.f32.mrf.mxu1 }
 0x110   :  { %v1855_v4 = vadd.f32 %v359_v3, %v223_v59 }
 0x111   :  { %v233_v5 = vpop.f32.mrf.mxu0  ;;  %v363_v6 = vpop.f32.mrf.mxu1 }
 0x112   :  { %v1857_v7 = vadd.f32 %v363_v6, %v227_v62 }
 0x113   :  { %v234_v8 = vpop.f32.mrf.mxu0  ;;  %v365_v9 = vpop.f32.mrf.mxu1 }
 0x114   :  { %v1859_v10 = vadd.f32 %v365_v9, %v229_v2 }
 0x115   :  { %v237_v12 = vpop.f32.mrf.mxu0  ;;  %v369_v13 = vpop.f32.mrf.mxu1 }
 0x117   :  { %v238_v14 = vpop.f32.mrf.mxu0  ;;  %v370_v15 = vpop.f32.mrf.mxu1 }
 0x119   :  { %v449_v17 = vpop.f32.mrf.mxu0 }
 0x11b   :  { %v450_v18 = vpop.f32.mrf.mxu0 }
 0x11d   :  { %v453_v20 = vpop.f32.mrf.mxu0 }
 0x11f   :  { %v454_v23 = vpop.f32.mrf.mxu0 }
 0x121   :  { %v457_v28 = vpop.f32.mrf.mxu0 }
 0x122   :  { %v520_v32 = vadd.f32 %v504_v25, %v457_v28 }
 0x123   :  { %v459_v35 = vpop.f32.mrf.mxu0 }
 0x124   :  { %v548_v36 = vadd.f32 %v541_v27, %v520_v32  ;;  %v521_v38 = vadd.f32 %v505_v30, %v459_v35  ;;  %v1915_v35 = vld [vmem:[#allocation8 + $0x78] sm:$0xff] }
 0x125   :  { %v463_v39 = vpop.f32.mrf.mxu0  ;;  %625 = vmatprep.subr.mxu1 %v1915_v35  ;;  %928 = vmatprep.subr.mxu0 %v1915_v35 }
 0x126   :  { %v1475_v41 = vmul.f32 -1.442695, %v548_v36  ;;  %v549_v42 = vadd.f32 %v545_v33, %v521_v38  ;;  %v522_v44 = vadd.f32 %v1833_v34, %v463_v39  ;;  %v1919_v36 = vld [vmem:[#allocation8 + $0x68] sm:$0xff]  ;;  %v1938_v39 = vld [vmem:[#allocation8 + $0x40] sm:$0xff] }
 0x127   :  { %v465_v45 = vpop.f32.mrf.mxu0  ;;  %v1934_v38 = vld [vmem:[#allocation8 + $0x48] sm:$0xff] }
 0x128   :  { %v1476_v47 = vmul.f32 -1.442695, %v549_v42  ;;  %v523_v24 = vadd.f32 %v1835_v37, %v465_v45  ;;  %v1874_v29 = vadd.f32 %v541_v27, %v522_v44  ;;  %1529 = vpow2.f32 %v1475_v41  ;;  %v1942_v41 = vld [vmem:[#allocation8 + $0x38] sm:$0xff]  ;;  %v1946_v42 = vld [vmem:[#allocation8 + $0x30] sm:$0xff]  ;;  %v1950_v44 = vld [vmem:[#allocation8 + $0x28] sm:$0xff] }
 0x129   :  { %v469_v48 = vpop.f32.mrf.mxu0  ;;  %v1954_v45 = vld [vmem:[#allocation8 + $0x20] sm:$0xff] }
 0x12a   :  { %1531 = vpow2.f32 %v1476_v47  ;;  %v524_v26 = vadd.f32 %v1837_v40, %v469_v48  ;;  %v1877_v31 = vadd.f32 %v545_v33, %v523_v24  ;;  %v1958_v47 = vld [vmem:[#allocation8 + $0x18] sm:$0xff]  ;;  %v1962_v24 = vld [vmem:[#allocation8 + $0x10] sm:$0xff]  ;;  %v1966_v48 = vld [vmem:[#allocation8 + $0x8] sm:$0xff] }
 0x12b   :  { %v471_v50 = vpop.f32.mrf.mxu0 }
 0x12c   :  { %v525_v51 = vadd.f32 %v1839_v43, %v471_v50  ;;  %v1880_v53 = vadd.f32 %v541_v27, %v524_v26  ;;  %v1970_v26 = vld [vmem:[#allocation8] sm:$0xff] }
 0x12d   :  { %v475_v54 = vpop.f32.mrf.mxu0 }
 0x12e   :  { %v526_v34 = vadd.f32 %v1841_v46, %v475_v54  ;;  %v1883_v56 = vadd.f32 %v545_v33, %v525_v51 }
 0x12f   :  { %v477_v37 = vpop.f32.mrf.mxu0 }
 0x130   :  { %v527_v57 = vadd.f32 %v1843_v49, %v477_v37  ;;  %v1886_v59 = vadd.f32 %v541_v27, %v526_v34 }
 0x131   :  { %v481_v60 = vpop.f32.mrf.mxu0 }
 0x132   :  { %v528_v40 = vadd.f32 %v1845_v52, %v481_v60  ;;  %v1889_v62 = vadd.f32 %v545_v33, %v527_v57 }
 0x133   :  { %v483_v63 = vpop.f32.mrf.mxu0 }
 0x134   :  { %v529_v43 = vadd.f32 %v1847_v55, %v483_v63  ;;  %v1892_v2 = vadd.f32 %v541_v27, %v528_v40 }
 0x135   :  { %v487_v3 = vpop.f32.mrf.mxu0  ;;  %v1530_v5 = vpop.eup %1529 }
 0x136   :  { %v530_v46 = vadd.f32 %v1849_v58, %v487_v3  ;;  %v1895_v6 = vadd.f32 %v545_v33, %v529_v43  ;;  %v570_v13 = vadd.f32 1.0, %v1530_v5 }
 0x137   :  { %v1532_v8 = vpop.eup %1531  ;;  %v489_v49 = vpop.f32.mrf.mxu0 }
 0x138   :  { %v571_v9 = vadd.f32 1.0, %v1532_v8  ;;  %v531_v11 = vadd.f32 %v1851_v61, %v489_v49  ;;  %v1898_v12 = vadd.f32 %v541_v27, %v530_v46 }
 0x139   :  { %v493_v52 = vpop.f32.mrf.mxu0 }
 0x13a   :  { %1533 = vrcp.f32 %v571_v9  ;;  %v532_v55 = vadd.f32 %v1853_v0, %v493_v52  ;;  %v1901_v14 = vadd.f32 %v545_v33, %v531_v11 }
 0x13b   :  { %v495_v15 = vpop.f32.mrf.mxu0  ;;  %1535 = vrcp.f32 %v570_v13 }
 0x13c   :  { %v533_v17 = vadd.f32 %v1855_v4, %v495_v15  ;;  %v1904_v58 = vadd.f32 %v541_v27, %v532_v55 }
 0x13d   :  { %v499_v18 = vpop.f32.mrf.mxu0 }
 0x13e   :  { %v534_v20 = vadd.f32 %v1857_v7, %v499_v18  ;;  %v1907_v21 = vadd.f32 %v545_v33, %v533_v17  ;;  %v1917_v7 = vld [vmem:[#allocation8 + $0x70] sm:$0xff] }
 0x13f   :  { %v501_v61 = vpop.f32.mrf.mxu0  ;;  %626 = vmatpush1.msra.mxu1 %v1917_v7  ;;  %929 = vmatpush1.msra.mxu0 %v1917_v7 }
 0x140   :  { %v535_v22 = vadd.f32 %v1859_v10, %v501_v61  ;;  %v1910_v23 = vadd.f32 %v541_v27, %v534_v20  ;;  %v1922_v10 = vld [vmem:[#allocation8 + $0x60] sm:$0xff]  ;;  %v1926_v27 = vld [vmem:[#allocation8 + $0x58] sm:$0xff]  ;;  %627 = vmatprep.subr.mxu1 %v1919_v36  ;;  %930 = vmatprep.subr.mxu0 %v1919_v36 }
 0x141   :  { %628 = vmatpush1.msra.mxu1 %v1922_v10  ;;  %931 = vmatpush1.msra.mxu0 %v1922_v10 }
 0x142   :  { %v1912_v25 = vadd.f32 %v545_v33, %v535_v22  ;;  %v1930_v33 = vld [vmem:[#allocation8 + $0x50] sm:$0xff]  ;;  %629 = vmatprep.subr.mxu1 %v1926_v27  ;;  %932 = vmatprep.subr.mxu0 %v1926_v27 }
 0x143   :  { %630 = vmatpush1.msra.mxu1 %v1930_v33  ;;  %933 = vmatpush1.msra.mxu0 %v1930_v33 }
 0x144   :  { %631 = vmatprep.subr.mxu1 %v1934_v38  ;;  %934 = vmatprep.subr.mxu0 %v1934_v38 }
 0x145   :  { %632 = vmatpush1.msra.mxu1 %v1938_v39  ;;  %935 = vmatpush1.msra.mxu0 %v1938_v39 }
 0x146   :  { %633 = vmatprep.subr.mxu1 %v1942_v41  ;;  %936 = vmatprep.subr.mxu0 %v1942_v41 }
 0x147   :  { %v1534_v0 = vpop.eup %1533  ;;  %634 = vmatpush1.msra.mxu1 %v1946_v42  ;;  %937 = vmatpush1.msra.mxu0 %v1946_v42 }
 0x148   :  { %v576_v28 = vmul.f32 2.0, %v1534_v0  ;;  %v1536_v32 = vpop.eup %1535  ;;  %635 = vmatprep.subr.mxu1 %v1950_v44  ;;  %938 = vmatprep.subr.mxu0 %v1950_v44 }
 0x149   :  { %636 = vmatpush1.msra.mxu1 %v1954_v45  ;;  %939 = vmatpush1.msra.mxu0 %v1954_v45  ;;  %v578_v50 = vmul.f32 0.0, %v1536_v32 }
 0x14a   :  { %v1477_v30 = vadd.f32 -1.0, %v576_v28  ;;  %637 = vmatprep.subr.mxu1 %v1958_v47  ;;  %940 = vmatprep.subr.mxu0 %v1958_v47 }
 0x14b   :  { %638 = vmatpush1.msra.mxu1 %v1962_v24  ;;  %941 = vmatpush1.msra.mxu0 %v1962_v24 }
 0x14c   :  { %v579_v4 = vmul.f32 %v1536_v32, %v1477_v30  ;;  %639 = vmatprep.subr.mxu1 %v1966_v48  ;;  %942 = vmatprep.subr.mxu0 %v1966_v48 }
 0x14d   :  { %640 = vmatpush1.msra.mxu1 %v1970_v26  ;;  %943 = vmatpush1.msra.mxu0 %v1970_v26 }
 0x14e   :  { %581 = vrot.lane.b32.xlu0 %v579_v4, %s1705_s2  ;;  %726 = vmatprep.subr.mxu1 %v1915_v35 }
 0x14f   :  { %1130 = vmatprep.subr.mxu0 %v1915_v35 }
 0x1c0   :  { %v582_v51 = vpop.permute.xlu0 %581 }
 0x1c1   :  { %v584_v54 = vadd.f32 %v582_v51, %v578_v50 }
 0x1c3   :  { %1537 = vtanh.f32 %v584_v54 }
 0x1d0   :  { %v1538_v34 = vpop.eup %1537 }
 0x1d1   :  { %v586_v37 = vmul.f32 %v1538_v34, %v1534_v0 }
 0x1d3   :  { %604 = vrot.lane.b32.xlu0 %v586_v37, %s1705_s2 }
 0x245   :  { %v605_v57 = vpop.permute.xlu0 %604 }
 0x246   :  { %1478 = vmatmul.mubr.msk.f32.vlgmr.msra.gmra.mxu1 %vm606_vm2, %v605_v57 }
 0x247   :  { %727 = vmatpush1.msra.mxu1 %v1917_v7  ;;  %774 = vmatprep.mubr.f32.mxu1 %v1704_v1 }
 0x248   :  { %728 = vmatprep.subr.mxu1 %v1919_v36 }
 0x249   :  { %729 = vmatpush1.msra.mxu1 %v1922_v10 }
 0x24a   :  { %730 = vmatprep.subr.mxu1 %v1926_v27 }
 0x24b   :  { %731 = vmatpush1.msra.mxu1 %v1930_v33 }
 0x24c   :  { %732 = vmatprep.subr.mxu1 %v1934_v38 }
 0x24d   :  { %733 = vmatpush1.msra.mxu1 %v1938_v39 }
 0x24e   :  { %734 = vmatprep.subr.mxu1 %v1942_v41 }
 0x24f   :  { %735 = vmatpush1.msra.mxu1 %v1946_v42 }
 0x250   :  { %736 = vmatprep.subr.mxu1 %v1950_v44 }
 0x251   :  { %737 = vmatpush1.msra.mxu1 %v1954_v45 }
 0x252   :  { %738 = vmatprep.subr.mxu1 %v1958_v47 }
 0x253   :  { %739 = vmatpush1.msra.mxu1 %v1962_v24 }
 0x254   :  { %740 = vmatprep.subr.mxu1 %v1966_v48 }
 0x255   :  { %741 = vmatpush1.msra.mxu1 %v1970_v26 }
 0x256   :  { %827 = vmatprep.subr.mxu1 %v1915_v35 }
 0x306   :  { %v675_v60 = vpop.f32.mrf.mxu1 }
 0x307   :  { %v680_v40 = vadd.f32 %v675_v60, %v1874_v29 }
 0x308   :  { %v677_v63 = vpop.f32.mrf.mxu1 }
 0x309   :  { %v1479_v43 = vmul.f32 -1.442695, %v680_v40  ;;  %v681_v3 = vadd.f32 %v677_v63, %v1877_v31 }
 0x30b   :  { %v1480_v5 = vmul.f32 -1.442695, %v681_v3  ;;  %1539 = vpow2.f32 %v1479_v43 }
 0x30d   :  { %1541 = vpow2.f32 %v1480_v5 }
 0x318   :  { %v1540_v46 = vpop.eup %1539 }
 0x319   :  { %v688_v9 = vadd.f32 1.0, %v1540_v46 }
 0x31a   :  { %v1542_v8 = vpop.eup %1541 }
 0x31b   :  { %v689_v49 = vadd.f32 1.0, %v1542_v8 }
 0x31d   :  { %1543 = vrcp.f32 %v689_v49 }
 0x31e   :  { %1545 = vrcp.f32 %v688_v9 }
 0x32a   :  { %v1544_v11 = vpop.eup %1543 }
 0x32b   :  { %v694_v52 = vmul.f32 2.0, %v1544_v11  ;;  %v1546_v55 = vpop.eup %1545 }
 0x32c   :  { %v696_v29 = vmul.f32 %v1546_v55, %v584_v54 }
 0x32d   :  { %v1481_v13 = vadd.f32 -1.0, %v694_v52 }
 0x32f   :  { %v697_v15 = vmul.f32 %v1546_v55, %v1481_v13 }
 0x331   :  { %699 = vrot.lane.b32.xlu1 %v697_v15, %s1705_s2 }
 0x3a3   :  { %v700_v17 = vpop.permute.xlu1 %699 }
 0x3a4   :  { %v702_v18 = vadd.f32 %v700_v17, %v696_v29 }
 0x3a6   :  { %1547 = vtanh.f32 %v702_v18 }
 0x3b3   :  { %v1548_v31 = vpop.eup %1547 }
 0x3b4   :  { %v704_v20 = vmul.f32 %v1548_v31, %v1544_v11 }
 0x3b6   :  { %706 = vrot.lane.b32.xlu1 %v704_v20, %s1705_s2 }
 0x428   :  { %v707_v61 = vpop.permute.xlu1 %706 }
 0x429   :  { %1482 = vmatmul.mubr.msk.f32.vlgmr.msra.gmra.mxu1 %vm606_vm2, %v707_v61 }
 0x42a   :  { %828 = vmatpush1.msra.mxu1 %v1917_v7  ;;  %875 = vmatprep.mubr.f32.mxu1 %v1704_v1 }
 0x42b   :  { %829 = vmatprep.subr.mxu1 %v1919_v36 }
 0x42c   :  { %830 = vmatpush1.msra.mxu1 %v1922_v10 }
 0x42d   :  { %831 = vmatprep.subr.mxu1 %v1926_v27 }
 0x42e   :  { %832 = vmatpush1.msra.mxu1 %v1930_v33 }
 0x42f   :  { %833 = vmatprep.subr.mxu1 %v1934_v38 }
 0x430   :  { %834 = vmatpush1.msra.mxu1 %v1938_v39 }
 0x431   :  { %835 = vmatprep.subr.mxu1 %v1942_v41 }
 0x432   :  { %836 = vmatpush1.msra.mxu1 %v1946_v42 }
 0x433   :  { %837 = vmatprep.subr.mxu1 %v1950_v44 }
 0x434   :  { %838 = vmatpush1.msra.mxu1 %v1954_v45 }
 0x435   :  { %839 = vmatprep.subr.mxu1 %v1958_v47 }
 0x436   :  { %840 = vmatpush1.msra.mxu1 %v1962_v24 }
 0x437   :  { %841 = vmatprep.subr.mxu1 %v1966_v48 }
 0x438   :  { %842 = vmatpush1.msra.mxu1 %v1970_v26 }
 0x439   :  { %1029 = vmatprep.subr.mxu1 %v1915_v35 }
 0x4e9   :  { %v776_v22 = vpop.f32.mrf.mxu1 }
 0x4ea   :  { %v781_v0 = vadd.f32 %v776_v22, %v1880_v53 }
 0x4eb   :  { %v778_v28 = vpop.f32.mrf.mxu1 }
 0x4ec   :  { %v1483_v30 = vmul.f32 -1.442695, %v781_v0  ;;  %v782_v32 = vadd.f32 %v778_v28, %v1883_v56 }
 0x4ee   :  { %v1484_v4 = vmul.f32 -1.442695, %v782_v32  ;;  %1549 = vpow2.f32 %v1483_v30 }
 0x4f0   :  { %1551 = vpow2.f32 %v1484_v4 }
 0x4fb   :  { %v1550_v50 = vpop.eup %1549 }
 0x4fc   :  { %v789_v34 = vadd.f32 1.0, %v1550_v50 }
 0x4fd   :  { %v1552_v51 = vpop.eup %1551 }
 0x4fe   :  { %v790_v54 = vadd.f32 1.0, %v1552_v51 }
 0x500   :  { %1553 = vrcp.f32 %v790_v54 }
 0x501   :  { %1555 = vrcp.f32 %v789_v34 }
 0x50d   :  { %v1554_v37 = vpop.eup %1553 }
 0x50e   :  { %v795_v57 = vmul.f32 2.0, %v1554_v37  ;;  %v1556_v40 = vpop.eup %1555 }
 0x50f   :  { %v797_v53 = vmul.f32 %v1556_v40, %v702_v18 }
 0x510   :  { %v1485_v60 = vadd.f32 -1.0, %v795_v57 }
 0x512   :  { %v798_v63 = vmul.f32 %v1556_v40, %v1485_v60 }
 0x514   :  { %800 = vrot.lane.b32.xlu0 %v798_v63, %s1705_s2 }
 0x586   :  { %v801_v43 = vpop.permute.xlu0 %800 }
 0x587   :  { %v803_v3 = vadd.f32 %v801_v43, %v797_v53 }
 0x589   :  { %1557 = vtanh.f32 %v803_v3 }
 0x596   :  { %v1558_v56 = vpop.eup %1557 }
 0x597   :  { %v805_v5 = vmul.f32 %v1558_v56, %v1554_v37 }
 0x599   :  { %807 = vrot.lane.b32.xlu1 %v805_v5, %s1705_s2 }
 0x60b   :  { %v808_v46 = vpop.permute.xlu1 %807 }
 0x60c   :  { %1486 = vmatmul.mubr.msk.f32.vlgmr.msra.gmra.mxu1 %vm606_vm2, %v808_v46 }
 0x60d   :  { %1030 = vmatpush1.msra.mxu1 %v1917_v7  ;;  %1077 = vmatprep.mubr.f32.mxu1 %v1704_v1 }
 0x60e   :  { %1031 = vmatprep.subr.mxu1 %v1919_v36 }
 0x60f   :  { %1032 = vmatpush1.msra.mxu1 %v1922_v10 }
 0x610   :  { %1033 = vmatprep.subr.mxu1 %v1926_v27 }
 0x611   :  { %1034 = vmatpush1.msra.mxu1 %v1930_v33 }
 0x612   :  { %1035 = vmatprep.subr.mxu1 %v1934_v38 }
 0x613   :  { %1036 = vmatpush1.msra.mxu1 %v1938_v39 }
 0x614   :  { %1037 = vmatprep.subr.mxu1 %v1942_v41 }
 0x615   :  { %1038 = vmatpush1.msra.mxu1 %v1946_v42 }
 0x616   :  { %1039 = vmatprep.subr.mxu1 %v1950_v44 }
 0x617   :  { %1040 = vmatpush1.msra.mxu1 %v1954_v45 }
 0x618   :  { %1041 = vmatprep.subr.mxu1 %v1958_v47 }
 0x619   :  { %1042 = vmatpush1.msra.mxu1 %v1962_v24 }
 0x61a   :  { %1043 = vmatprep.subr.mxu1 %v1966_v48 }
 0x61b   :  { %1044 = vmatpush1.msra.mxu1 %v1970_v26 }
 0x61c   :  { %1231 = vmatprep.subr.mxu1 %v1915_v35 }
 0x6cc   :  { %v877_v8 = vpop.f32.mrf.mxu1 }
 0x6cd   :  { %v882_v49 = vadd.f32 %v877_v8, %v1886_v59 }
 0x6ce   :  { %v879_v9 = vpop.f32.mrf.mxu1 }
 0x6cf   :  { %v1487_v11 = vmul.f32 -1.442695, %v882_v49  ;;  %v883_v52 = vadd.f32 %v879_v9, %v1889_v62 }
 0x6d1   :  { %v1488_v13 = vmul.f32 -1.442695, %v883_v52  ;;  %1559 = vpow2.f32 %v1487_v11 }
 0x6d3   :  { %1561 = vpow2.f32 %v1488_v13 }
 0x6de   :  { %v1560_v55 = vpop.eup %1559 }
 0x6df   :  { %v890_v17 = vadd.f32 1.0, %v1560_v55 }
 0x6e0   :  { %v1562_v15 = vpop.eup %1561 }
 0x6e1   :  { %v891_v29 = vadd.f32 1.0, %v1562_v15 }
 0x6e3   :  { %1563 = vrcp.f32 %v891_v29 }
 0x6e4   :  { %1565 = vrcp.f32 %v890_v17 }
 0x6f0   :  { %v1564_v18 = vpop.eup %1563 }
 0x6f1   :  { %v896_v31 = vmul.f32 2.0, %v1564_v18  ;;  %v1566_v35 = vpop.eup %1565 }
 0x6f2   :  { %v898_v59 = vmul.f32 %v1566_v35, %v803_v3 }
 0x6f3   :  { %v1489_v20 = vadd.f32 -1.0, %v896_v31 }
 0x6f5   :  { %v899_v61 = vmul.f32 %v1566_v35, %v1489_v20 }
 0x6f7   :  { %901 = vrot.lane.b32.xlu0 %v899_v61, %s1705_s2 }
 0x769   :  { %v902_v22 = vpop.permute.xlu0 %901 }
 0x76a   :  { %v904_v0 = vadd.f32 %v902_v22, %v898_v59 }
 0x76c   :  { %1567 = vtanh.f32 %v904_v0 }
 0x779   :  { %v1568_v62 = vpop.eup %1567 }
 0x77a   :  { %v906_v28 = vmul.f32 %v1568_v62, %v1564_v18 }
 0x77c   :  { %908 = vrot.lane.b32.xlu1 %v906_v28, %s1705_s2 }
 0x7ee   :  { %v909_v30 = vpop.permute.xlu1 %908 }
 0x7ef   :  { %1490 = vmatmul.mubr.msk.f32.vlgmr.msra.gmra.mxu0 %vm606_vm2, %v909_v30 }
 0x7f0   :  { %1131 = vmatpush1.msra.mxu0 %v1917_v7  ;;  %1178 = vmatprep.mubr.f32.mxu0 %v1704_v1 }
 0x7f1   :  { %1132 = vmatprep.subr.mxu0 %v1919_v36 }
 0x7f2   :  { %1133 = vmatpush1.msra.mxu0 %v1922_v10 }
 0x7f3   :  { %1134 = vmatprep.subr.mxu0 %v1926_v27 }
 0x7f4   :  { %1135 = vmatpush1.msra.mxu0 %v1930_v33 }
 0x7f5   :  { %1136 = vmatprep.subr.mxu0 %v1934_v38 }
 0x7f6   :  { %1137 = vmatpush1.msra.mxu0 %v1938_v39 }
 0x7f7   :  { %1138 = vmatprep.subr.mxu0 %v1942_v41 }
 0x7f8   :  { %1139 = vmatpush1.msra.mxu0 %v1946_v42 }
 0x7f9   :  { %1140 = vmatprep.subr.mxu0 %v1950_v44 }
 0x7fa   :  { %1141 = vmatpush1.msra.mxu0 %v1954_v45 }
 0x7fb   :  { %1142 = vmatprep.subr.mxu0 %v1958_v47 }
 0x7fc   :  { %1143 = vmatpush1.msra.mxu0 %v1962_v24 }
 0x7fd   :  { %1144 = vmatprep.subr.mxu0 %v1966_v48 }
 0x7fe   :  { %1145 = vmatpush1.msra.mxu0 %v1970_v26 }
 0x7ff   :  { %1510 = vmatprep.subr.mxu0 %v1704_v1 }
 0x8af   :  { %v978_v32 = vpop.f32.mrf.mxu0 }
 0x8b0   :  { %v983_v4 = vadd.f32 %v978_v32, %v1892_v2 }
 0x8b1   :  { %v980_v50 = vpop.f32.mrf.mxu0 }
 0x8b2   :  { %v1491_v51 = vmul.f32 -1.442695, %v983_v4  ;;  %v984_v54 = vadd.f32 %v980_v50, %v1895_v6 }
 0x8b4   :  { %v1492_v34 = vmul.f32 -1.442695, %v984_v54  ;;  %1569 = vpow2.f32 %v1491_v51 }
 0x8b6   :  { %1571 = vpow2.f32 %v1492_v34 }
 0x8c1   :  { %v1570_v37 = vpop.eup %1569 }
 0x8c2   :  { %v991_v40 = vadd.f32 1.0, %v1570_v37 }
 0x8c3   :  { %v1572_v57 = vpop.eup %1571 }
 0x8c4   :  { %v992_v60 = vadd.f32 1.0, %v1572_v57 }
 0x8c6   :  { %1573 = vrcp.f32 %v992_v60 }
 0x8c7   :  { %1575 = vrcp.f32 %v991_v40 }
 0x8d3   :  { %v1574_v63 = vpop.eup %1573 }
 0x8d4   :  { %v997_v53 = vmul.f32 2.0, %v1574_v63  ;;  %v1576_v3 = vpop.eup %1575 }
 0x8d5   :  { %v999_v2 = vmul.f32 %v1576_v3, %v904_v0 }
 0x8d6   :  { %v1493_v43 = vadd.f32 -1.0, %v997_v53 }
 0x8d8   :  { %v1000_v56 = vmul.f32 %v1576_v3, %v1493_v43 }
 0x8da   :  { %1002 = vrot.lane.b32.xlu0 %v1000_v56, %s1705_s2 }
 0x94c   :  { %v1003_v5 = vpop.permute.xlu0 %1002 }
 0x94d   :  { %v1005_v46 = vadd.f32 %v1003_v5, %v999_v2 }
 0x94f   :  { %1577 = vtanh.f32 %v1005_v46 }
 0x95c   :  { %v1578_v6 = vpop.eup %1577 }
 0x95d   :  { %v1007_v8 = vmul.f32 %v1578_v6, %v1574_v63 }
 0x95f   :  { %1009 = vrot.lane.b32.xlu1 %v1007_v8, %s1705_s2 }
 0x9d1   :  { %v1010_v49 = vpop.permute.xlu1 %1009 }
 0x9d2   :  { %1494 = vmatmul.mubr.msk.f32.vlgmr.msra.gmra.mxu1 %vm606_vm2, %v1010_v49 }
 0x9d3   :  { %1232 = vmatpush1.msra.mxu1 %v1917_v7  ;;  %1279 = vmatprep.mubr.f32.mxu1 %v1704_v1 }
 0x9d4   :  { %1233 = vmatprep.subr.mxu1 %v1919_v36 }
 0x9d5   :  { %1234 = vmatpush1.msra.mxu1 %v1922_v10 }
 0x9d6   :  { %1235 = vmatprep.subr.mxu1 %v1926_v27 }
 0x9d7   :  { %1236 = vmatpush1.msra.mxu1 %v1930_v33 }
 0x9d8   :  { %1237 = vmatprep.subr.mxu1 %v1934_v38 }
 0x9d9   :  { %1238 = vmatpush1.msra.mxu1 %v1938_v39 }
 0x9da   :  { %1239 = vmatprep.subr.mxu1 %v1942_v41 }
 0x9db   :  { %1240 = vmatpush1.msra.mxu1 %v1946_v42 }
 0x9dc   :  { %1241 = vmatprep.subr.mxu1 %v1950_v44 }
 0x9dd   :  { %1242 = vmatpush1.msra.mxu1 %v1954_v45 }
 0x9de   :  { %1243 = vmatprep.subr.mxu1 %v1958_v47 }
 0x9df   :  { %1244 = vmatpush1.msra.mxu1 %v1962_v24 }
 0x9e0   :  { %1245 = vmatprep.subr.mxu1 %v1966_v48 }
 0x9e1   :  { %1246 = vmatpush1.msra.mxu1 %v1970_v26 }
 0xa92   :  { %v1079_v7 = vpop.f32.mrf.mxu1 }
 0xa93   :  { %v1084_v36 = vadd.f32 %v1079_v7, %v1898_v12 }
 0xa94   :  { %v1081_v10 = vpop.f32.mrf.mxu1 }
 0xa95   :  { %v1495_v27 = vmul.f32 -1.442695, %v1084_v36  ;;  %v1085_v33 = vadd.f32 %v1081_v10, %v1901_v14 }
 0xa97   :  { %v1496_v38 = vmul.f32 -1.442695, %v1085_v33  ;;  %1579 = vpow2.f32 %v1495_v27 }
 0xa99   :  { %1581 = vpow2.f32 %v1496_v38 }
 0xaa4   :  { %v1580_v39 = vpop.eup %1579 }
 0xaa5   :  { %v1092_v44 = vadd.f32 1.0, %v1580_v39 }
 0xaa6   :  { %v1582_v41 = vpop.eup %1581 }
 0xaa7   :  { %v1093_v42 = vadd.f32 1.0, %v1582_v41 }
 0xaa9   :  { %1583 = vrcp.f32 %v1093_v42 }
 0xaaa   :  { %1585 = vrcp.f32 %v1092_v44 }
 0xab6   :  { %v1584_v45 = vpop.eup %1583 }
 0xab7   :  { %v1098_v47 = vmul.f32 2.0, %v1584_v45  ;;  %v1586_v48 = vpop.eup %1585 }
 0xab8   :  { %v1100_v12 = vmul.f32 %v1586_v48, %v1005_v46 }
 0xab9   :  { %v1497_v24 = vadd.f32 -1.0, %v1098_v47 }
 0xabb   :  { %v1101_v26 = vmul.f32 %v1586_v48, %v1497_v24  ;;  %v1333_v24 = vld [vmem:[#allocation2] sm:$0x1]  ;;  %v1707_v48 = vmov 0  }
 0xabc   :  { %1527 = vset.pattern.permute.xlu1 %v1707_v48  ;;  %1528 = vset.pattern.permute.xlu0 %v1707_v48 }
 0xabd   :  { %1103 = vrot.lane.b32.xlu0 %v1101_v26, %s1705_s2 }
 0xb2f   :  { %v1104_v9 = vpop.permute.xlu0 %1103 }
 0xb30   :  { %v1106_v11 = vadd.f32 %v1104_v9, %v1100_v12 }
 0xb32   :  { %1587 = vtanh.f32 %v1106_v11 }
 0xb3f   :  { %v1588_v14 = vpop.eup %1587 }
 0xb40   :  { %v1108_v52 = vmul.f32 %v1588_v14, %v1584_v45 }
 0xb42   :  { %1110 = vrot.lane.b32.xlu1 %v1108_v52, %s1705_s2 }
 0xbb4   :  { %v1111_v13 = vpop.permute.xlu1 %1110 }
 0xbb5   :  { %1498 = vmatmul.mubr.msk.f32.vlgmr.msra.gmra.mxu0 %vm606_vm2, %v1111_v13 }
 0xbb6   :  { %1512 = vmatprep.mubr.msk.f32.mxu0 %vm1706_vm3, %v1704_v1 }
 0xc75   :  { %v1180_v55 = vpop.f32.mrf.mxu0 }
 0xc76   :  { %v1185_v15 = vadd.f32 %v1180_v55, %v1904_v58 }
 0xc77   :  { %v1182_v29 = vpop.f32.mrf.mxu0 }
 0xc78   :  { %v1499_v17 = vmul.f32 -1.442695, %v1185_v15  ;;  %v1186_v18 = vadd.f32 %v1182_v29, %v1907_v21 }
 0xc7a   :  { %v1500_v31 = vmul.f32 -1.442695, %v1186_v18  ;;  %1589 = vpow2.f32 %v1499_v17 }
 0xc7c   :  { %1591 = vpow2.f32 %v1500_v31 }
 0xc87   :  { %v1590_v20 = vpop.eup %1589 }
 0xc88   :  { %v1193_v59 = vadd.f32 1.0, %v1590_v20 }
 0xc89   :  { %v1592_v35 = vpop.eup %1591 }
 0xc8a   :  { %v1194_v61 = vadd.f32 1.0, %v1592_v35 }
 0xc8c   :  { %1593 = vrcp.f32 %v1194_v61 }
 0xc8d   :  { %1595 = vrcp.f32 %v1193_v59 }
 0xc99   :  { %v1594_v22 = vpop.eup %1593 }
 0xc9a   :  { %v1199_v0 = vmul.f32 2.0, %v1594_v22  ;;  %v1596_v28 = vpop.eup %1595 }
 0xc9b   :  { %v1201_v58 = vmul.f32 %v1596_v28, %v1106_v11  ;;  %v1332_v11 = vld [vmem:[%s2120_s4] sm:$0x1] }
 0xc9c   :  { %v1501_v62 = vadd.f32 -1.0, %v1199_v0 }
 0xc9e   :  { %v1202_v30 = vmul.f32 %v1596_v28, %v1501_v62 }
 0xca0   :  { %1204 = vrot.lane.b32.xlu0 %v1202_v30, %s1705_s2 }
 0xd12   :  { %v1205_v32 = vpop.permute.xlu0 %1204 }
 0xd13   :  { %v1207_v4 = vadd.f32 %v1205_v32, %v1201_v58 }
 0xd15   :  { %1597 = vtanh.f32 %v1207_v4 }
 0xd22   :  { %v1598_v21 = vpop.eup %1597 }
 0xd23   :  { %v1209_v50 = vmul.f32 %v1598_v21, %v1594_v22 }
 0xd25   :  { %1211 = vrot.lane.b32.xlu1 %v1209_v50, %s1705_s2 }
 0xd97   :  { %v1212_v51 = vpop.permute.xlu1 %1211 }
 0xd98   :  { %1502 = vmatmul.mubr.msk.f32.vlgmr.msra.gmra.mxu1 %vm606_vm2, %v1212_v51 }
 0xe58   :  { %v1281_v54 = vpop.f32.mrf.mxu1 }
 0xe59   :  { %v1286_v34 = vadd.f32 %v1281_v54, %v1910_v23 }
 0xe5a   :  { %v1283_v37 = vpop.f32.mrf.mxu1 }
 0xe5b   :  { %v1503_v57 = vmul.f32 -1.442695, %v1286_v34  ;;  %v1287_v60 = vadd.f32 %v1283_v37, %v1912_v25 }
 0xe5d   :  { %v1504_v40 = vmul.f32 -1.442695, %v1287_v60  ;;  %1599 = vpow2.f32 %v1503_v57 }
 0xe5f   :  { %1601 = vpow2.f32 %v1504_v40 }
 0xe6a   :  { %v1600_v63 = vpop.eup %1599 }
 0xe6b   :  { %v1294_v3 = vadd.f32 1.0, %v1600_v63 }
 0xe6c   :  { %v1602_v53 = vpop.eup %1601 }
 0xe6d   :  { %v1295_v43 = vadd.f32 1.0, %v1602_v53 }
 0xe6f   :  { %1603 = vrcp.f32 %v1295_v43 }
 0xe70   :  { %1605 = vrcp.f32 %v1294_v3 }
 0xe7c   :  { %v1604_v56 = vpop.eup %1603 }
 0xe7d   :  { %v1300_v2 = vmul.f32 2.0, %v1604_v56  ;;  %v1606_v46 = vpop.eup %1605 }
 0xe7e   :  { %v1302_v23 = vmul.f32 %v1606_v46, %v1207_v4 }
 0xe7f   :  { %v1505_v5 = vadd.f32 -1.0, %v1300_v2 }
 0xe81   :  { %v1303_v6 = vmul.f32 %v1606_v46, %v1505_v5 }
 0xe83   :  { %1305 = vrot.lane.b32.xlu0 %v1303_v6, %s1705_s2 }
 0xef5   :  { %v1306_v8 = vpop.permute.xlu0 %1305 }
 0xef6   :  { %v1308_v49 = vadd.f32 %v1306_v8, %v1302_v23 }
 0xef8   :  { %1607 = vtanh.f32 %v1308_v49 }
 0xf05   :  { %v1608_v25 = vpop.eup %1607 }
 0xf06   :  { %v1310_v7 = vmul.f32 %v1608_v25, %v1604_v56 }
 0xf08   :  { %1312 = vrot.lane.b32.xlu1 %v1310_v7, %s1705_s2 }
 0xf7a   :  { %v1313_v36 = vpop.permute.xlu1 %1312 }
 0xf7b   :  { %v1315_v10 = vsel %vm606_vm2, %v1313_v36, 0.0 }
 0xf7c   :  { %1316 = vadd.xlane.f32.xlu0 %v1315_v10 }
0x1005   :  { %v1317_v27 = vpop.xlane.xlu0 %1316 }
0x1006   :  { %v1318_v33 = vmul.f32 0.015625, %v1317_v27 }
0x1008   :  { %v1319_v38 = vsub.f32 %v1310_v7, %v1318_v33 }
0x100a   :  { %v1320_v39 = vmul.f32 %v1319_v38, %v1319_v38 }
0x100c   :  { %1322 = vrot.lane.b32.xlu1 %v1320_v39, %s1705_s2 }
0x107e   :  { %v1323_v41 = vpop.permute.xlu1 %1322 }
0x107f   :  { %v1325_v42 = vsel %vm606_vm2, %v1323_v41, 0.0 }
0x1080   :  { %1326 = vadd.xlane.f32.xlu1 %v1325_v42 }
0x1091   :  { %1336 = vperm.xlu1 %1527, %v1333_v24  }
0x1109   :  { %v1327_v44 = vpop.xlane.xlu1 %1326 }
0x110a   :  { %v1328_v45 = vmul.f32 0.015625, %v1327_v44 }
0x110c   :  { %v1329_v47 = vadd.f32 1e-05, %v1328_v45 }
0x110d   :  { %v1337_v14 = vpop.permute.xlu1 %1336 }
0x110e   :  { %1609 = vrsqrt.f32 %v1329_v47  ;;  %v1342_v1 = vrot.slane %v1337_v14, %v540_v19 }
0x111b   :  { %v1610_v26 = vpop.eup %1609 }
0x111c   :  { %v1331_v12 = vmul.f32 %v1610_v26, %v1319_v38 }
0x111e   :  { %1344 = vrot.lane.b32.xlu0 %v1331_v12, %s1705_s2 }
0x1190   :  { %v1345_v9 = vpop.permute.xlu0 %1344 }
0x1191   :  { %1511 = vmatpush3.xpose.msk.msra.mxu0 %vm606_vm2, %v1345_v9 }
0x1194   :  { %1513 = vmatmul.mubr.msk.f32.vlgmr.msra.gmra.mxu0 %vm606_vm2, %v1332_v11 }
0x1254   :  { %v1417_v52 = vpop.f32.mrf.mxu0 }
0x1255   :  { %v1418_v13 = vadd.f32 %v1417_v52, %v1342_v1 }
0x1256   :  { %v1514_v55 = vpop.f32.mrf.mxu0 }
0x1257   :  { %1422 = vst.msk [vmem:[#allocation9] sm:$0x1] %vm1421_vm4, %v1418_v13 }
0x1258   :  { %1682 = shalt.err (!%p1679_p5)
}
0x1259   :  { %1432 = dma.vmem_to_hbm [thread:$0]  %s1430_s19, 16, %s2122_s6, [#allocation5]  }
0x125a   :  { %1695 = dma.done.wait [#allocation5], 16  }
0x125b   :  { %1696 = vsyncadd [#allocation5], 4294967280 }
0x125c   :  { %1436 = vsyncpa [#allocation4], 1 }
0x125d   :  { %1437 = vsyncpa [#allocation7], 1 }
0x125e   :  { %1438 = vsyncpa [#allocation5], 1 }

</bundles_post_ra>
